<compile_context>
chip_gen: v7x
topology: tpu7x:2x2x1
jax: 0.10.0
libtpu: 0.0.40
codegen_flags: <defaults>
</compile_context>

<pallas_src>
import functools

import jax
import jax.numpy as jnp
from jax import lax
from jax.experimental import pallas as pl
from jax.experimental.pallas import tpu as pltpu

EPS = 1e-5
_ARB1 = pltpu.CompilerParams(dimension_semantics=("arbitrary",))


# ----------------------------- Pallas kernels -----------------------------

def _conv_bn_lrelu_kernel(w_ref, a_ref, g_ref, b_ref, o_ref, *, inv_m):
    """Fused conv-as-matmul + BatchNorm(training stats) + LeakyReLU(0.2).

    w_ref: (Cout, K)  bf16  folded conv weight
    a_ref: (K, M)     bf16  im2col patches, M = N*Ho*Wo on the lane axis
    g_ref, b_ref: (Cout, 1) f32  BN gamma / beta
    o_ref: (Cout, M)  bf16  normalized + activated output (lane dense)
    """
    y = jnp.dot(w_ref[...], a_ref[...],
                preferred_element_type=jnp.float32)              # MXU, (Cout, M) f32
    mean = jnp.sum(y, axis=1, keepdims=True) * inv_m             # (Cout, 1)
    yc = y - mean
    var = jnp.sum(yc * yc, axis=1, keepdims=True) * inv_m        # two-pass (stable) var
    scale = g_ref[...] * lax.rsqrt(var + EPS)                    # EUP rsqrt
    z = yc * scale + b_ref[...]
    z = jnp.where(z > 0, z, 0.2 * z)                             # LeakyReLU(0.2), f32
    o_ref[...] = z.astype(o_ref.dtype)                           # bf16 store


def _conv_bn_lrelu_head_kernel(w_ref, a_ref, g_ref, b_ref, w4_ref, o_ref, *,
                               inv_m, n_batch, spatial):
    """conv3 (MXU matmul) + BN + LeakyReLU + fused final Cout=1 conv + sigmoid.

    The (Cout3, N*spatial) activation stays in registers; the final 4x4 conv is a
    per-sample VPU multiply + lane/sublane reduce (no extra pallas_call, no HBM
    round trip of the conv3 activation).

    w_ref : (Cout3, K)        bf16
    a_ref : (K, N*spatial)    bf16
    g_ref, b_ref: (Cout3, 1)  f32
    w4_ref: (Cout3, spatial)  f32   final conv weight (full contraction per sample)
    o_ref : (1, N)            f32   sigmoid probabilities
    """
    y = jnp.dot(w_ref[...], a_ref[...],
                preferred_element_type=jnp.float32)              # (Cout3, N*spatial) f32
    mean = jnp.sum(y, axis=1, keepdims=True) * inv_m
    yc = y - mean
    var = jnp.sum(yc * yc, axis=1, keepdims=True) * inv_m
    scale = g_ref[...] * lax.rsqrt(var + EPS)
    z = yc * scale + b_ref[...]
    z = jnp.where(z > 0, z, 0.2 * z)                             # f32, stays resident

    w4 = w4_ref[...]                                             # (Cout3, spatial)
    outs = []
    for n in range(n_batch):                                     # tiny static loop
        blk = z[:, n * spatial:(n + 1) * spatial] * w4           # (Cout3, spatial) VPU
        s = jnp.sum(blk, axis=1, keepdims=True)                  # lane reduce (XLU)
        s = jnp.sum(s, axis=0, keepdims=True)                    # (1, 1) logit
        outs.append(1.0 / (1.0 + jnp.exp(-s)))                   # exact sigmoid, f32
    o_ref[...] = jnp.concatenate(outs, axis=1)                   # (1, N)


# ----------------------------- Pallas wrappers -----------------------------

def conv_bn_lrelu(w_flat, a, gamma, beta):
    C, K = w_flat.shape
    _, M = a.shape
    kernel = functools.partial(_conv_bn_lrelu_kernel, inv_m=1.0 / M)
    return pl.pallas_call(
        kernel,
        out_shape=jax.ShapeDtypeStruct((C, M), jnp.bfloat16),
        grid=(1,),
        in_specs=[pl.BlockSpec((C, K), lambda i: (0, 0)),
                  pl.BlockSpec((K, M), lambda i: (0, 0)),
                  pl.BlockSpec((C, 1), lambda i: (0, 0)),
                  pl.BlockSpec((C, 1), lambda i: (0, 0))],
        out_specs=pl.BlockSpec((C, M), lambda i: (0, 0)),
        compiler_params=_ARB1,
    )(w_flat, a, gamma.reshape(C, 1), beta.reshape(C, 1))


def conv_bn_lrelu_head(w_flat, a, gamma, beta, w4, n_batch, spatial):
    C, K = w_flat.shape
    _, M = a.shape
    kernel = functools.partial(_conv_bn_lrelu_head_kernel, inv_m=1.0 / M,
                               n_batch=n_batch, spatial=spatial)
    return pl.pallas_call(
        kernel,
        out_shape=jax.ShapeDtypeStruct((1, n_batch), jnp.float32),
        grid=(1,),
        in_specs=[pl.BlockSpec((C, K), lambda i: (0, 0)),
                  pl.BlockSpec((K, M), lambda i: (0, 0)),
                  pl.BlockSpec((C, 1), lambda i: (0, 0)),
                  pl.BlockSpec((C, 1), lambda i: (0, 0)),
                  pl.BlockSpec((C, spatial), lambda i: (0, 0))],
        out_specs=pl.BlockSpec((1, n_batch), lambda i: (0, 0)),
        compiler_params=_ARB1,
    )(w_flat, a, gamma.reshape(C, 1), beta.reshape(C, 1), w4)


# ----------------------------- JAX glue -----------------------------

def im2col_cnhw(x, kh, kw, stride, pad):
    """x: (C, N, H, W) -> (C*kh*kw, N*Ho*Wo).  Runs in the activation dtype (bf16).

    Row order (c, i, j) matches a PyTorch weight reshaped as (Cout, Cin*kh*kw);
    column order (n, ho, wo) so the kernel output reshapes straight back to CNHW."""
    C, N, H, W = x.shape
    xp = jnp.pad(x, ((0, 0), (0, 0), (pad, pad), (pad, pad)))
    Hp, Wp = H + 2 * pad, W + 2 * pad
    Ho = (Hp - kh) // stride + 1
    Wo = (Wp - kw) // stride + 1
    taps = []
    for i in range(kh):
        for j in range(kw):
            taps.append(xp[:, :, i:Hp - kh + i + 1:stride, j:Wp - kw + j + 1:stride])
    pat = jnp.stack(taps, axis=1)                  # (C, kh*kw, N, Ho, Wo)
    return pat.reshape(C * kh * kw, N * Ho * Wo), Ho, Wo


# ----------------------------- Discriminator forward -----------------------------

_CONV_SPECS = [(3, 2, 3), (4, 2, 1), (4, 2, 1)]    # (kernel, stride, pad) for conv1..3


def discriminator_forward(x_nchw, params):
    N = x_nchw.shape[0]
    # NCHW -> CNHW; activations / glue in bf16 (math stays f32 inside the kernels)
    x = jnp.transpose(x_nchw, (1, 0, 2, 3)).astype(jnp.bfloat16)

    # conv1, conv2: one fused Pallas kernel each, bf16 activation writeback
    for idx, (k, s, p) in enumerate(_CONV_SPECS[:2]):
        w = params[f"w{idx}"]                      # (Cout, Cin, k, k)
        a, Ho, Wo = im2col_cnhw(x, k, k, s, p)     # (Cin*k*k, N*Ho*Wo) bf16
        w_flat = w.reshape(w.shape[0], -1).astype(jnp.bfloat16)
        y = conv_bn_lrelu(w_flat, a,
                          params[f"gamma{idx}"], params[f"beta{idx}"])  # (Cout, M) bf16
        x = y.reshape(-1, N, Ho, Wo)               # stay in CNHW

    # conv3 + BN + LeakyReLU + final conv (k=4, s=1, p=0 on the 4x4 map) + sigmoid,
    # all fused into a single Pallas kernel.
    k, s, p = _CONV_SPECS[2]
    a, Ho, Wo = im2col_cnhw(x, k, k, s, p)         # (Cin*k*k, N*Ho*Wo) bf16
    w_flat = params["w2"].reshape(params["w2"].shape[0], -1).astype(jnp.bfloat16)
    spatial = Ho * Wo                              # final conv's full per-sample field
    w4 = params["w3"].reshape(-1, spatial)         # (Cout3, 4*4) f32, order (c, i, j)
    out = conv_bn_lrelu_head(w_flat, a, params["gamma2"], params["beta2"],
                             w4, N, spatial)       # (1, N) sigmoid probs
    return out.reshape(-1)                         # == output.view(-1, 1).squeeze(1)


# ----------------------------- params & reference -----------------------------

def init_params(key, ninput, ndf):
    shapes = [(ndf * 2, ninput, 3, 3),
              (ndf * 4, ndf * 2, 4, 4),
              (ndf * 8, ndf * 4, 4, 4),
              (1, ndf * 8, 4, 4)]
    params = {}
    for i, s in enumerate(shapes):
        key, kw_ = jax.random.split(key)
        params[f"w{i}"] = 0.05 * jax.random.normal(kw_, s, jnp.float32)
        if i < 3:
            key, kg, kb = jax.random.split(key, 3)
            c = s[0]
            params[f"gamma{i}"] = 1.0 + 0.1 * jax.random.normal(kg, (c,), jnp.float32)
            params[f"beta{i}"] = 0.1 * jax.random.normal(kb, (c,), jnp.float32)
    return params


def ref_forward(x, params):
    """Pure-JAX f32 reference mirroring the PyTorch module (training-mode BatchNorm)."""
    def conv(x, w, s, p):
        return lax.conv_general_dilated(
            x, w, (s, s), [(p, p), (p, p)],
            dimension_numbers=("NCHW", "OIHW", "NCHW"))

    for i, (k, s, p) in enumerate(_CONV_SPECS):
        x = conv(x, params[f"w{i}"], s, p)
        mean = x.mean(axis=(0, 2, 3), keepdims=True)
        var = x.var(axis=(0, 2, 3), keepdims=True)
        g = params[f"gamma{i}"].reshape(1, -1, 1, 1)
        b = params[f"beta{i}"].reshape(1, -1, 1, 1)
        x = g * (x - mean) * lax.rsqrt(var + EPS) + b
        x = jnp.where(x > 0, x, 0.2 * x)
    x = conv(x, params["w3"], 1, 0)
    return jax.nn.sigmoid(x).reshape(-1)


if __name__ == "__main__":
    key = jax.random.PRNGKey(0)
    kx, kp = jax.random.split(key)

    B, ninput, ndf, H = 2, 1, 8, 28        # 28x28 -> 16 -> 8 -> 4 -> 1x1 (scalar / sample)
    x = jax.random.normal(kx, (B, ninput, H, H), jnp.float32)
    params = init_params(kp, ninput, ndf)

    out = jax.jit(discriminator_forward)(x, params)
    out = jax.block_until_ready(out)

    ref = ref_forward(x, params)
    assert out.shape == (B,), out.shape
    # Tolerance reflects bf16 matmul operands / bf16 activation storage (f32
    # accumulate and f32 BN / sigmoid math) vs the all-f32 reference.
    assert jnp.allclose(out, ref, rtol=1e-2, atol=1e-2), (out, ref)
    print("KERNEL_OK")
</pallas_src>

<mosaic_0001>
module attributes {stable_mosaic.version = 11 : i64} {
  func.func @_conv_bn_lrelu_kernel(%arg0: i32, %arg1: memref<16x9xbf16, #tpu.memory_space<vmem>>, %arg2: memref<9x512xbf16, #tpu.memory_space<vmem>>, %arg3: memref<16x1xf32, #tpu.memory_space<vmem>>, %arg4: memref<16x1xf32, #tpu.memory_space<vmem>>, %arg5: memref<16x512xbf16, #tpu.memory_space<vmem>>) attributes {dimension_semantics = [#tpu.dimension_semantics<arbitrary>], iteration_bounds = array<i64: 1>, scalar_prefetch = 0 : i64, scratch_operands = 0 : i64, tpu.core_type = #tpu.core_type<tc>, window_params = [{pipeline_mode = #tpu.pipeline_mode<synchronous>, transform_indices = @transform_0, window_bounds = array<i64: 16, 9>}, {pipeline_mode = #tpu.pipeline_mode<synchronous>, transform_indices = @transform_1, window_bounds = array<i64: 9, 512>}, {pipeline_mode = #tpu.pipeline_mode<synchronous>, transform_indices = @transform_2, window_bounds = array<i64: 16, 1>}, {pipeline_mode = #tpu.pipeline_mode<synchronous>, transform_indices = @transform_3, window_bounds = array<i64: 16, 1>}, {pipeline_mode = #tpu.pipeline_mode<synchronous>, transform_indices = @transform_4, window_bounds = array<i64: 16, 512>}]} {
    %c0 = arith.constant 0 : index
    %c0_0 = arith.constant 0 : index
    %0 = vector.load %arg1[%c0, %c0_0] : memref<16x9xbf16, #tpu.memory_space<vmem>>, vector<16x9xbf16>
    %c0_1 = arith.constant 0 : index
    %c0_2 = arith.constant 0 : index
    %1 = vector.load %arg2[%c0_1, %c0_2] : memref<9x512xbf16, #tpu.memory_space<vmem>>, vector<9x512xbf16>
    %cst = arith.constant dense<0.000000e+00> : vector<16x512xf32>
    %2 = tpu.matmul %0, %1, %cst {dimension_numbers = #tpu.dot_dimension_numbers<[1], [0], [0], [1], [0, 0, 1, 1], [], []>} : vector<16x9xbf16>, vector<9x512xbf16>, vector<16x512xf32> -> vector<16x512xf32>
    %cst_3 = arith.constant dense<0.000000e+00> : vector<16xf32>
    %3 = vector.multi_reduction <add>, %2, %cst_3 [1] : vector<16x512xf32> to vector<16xf32>
    %4 = vector.shape_cast %3 : vector<16xf32> to vector<16x1xf32>
    %cst_4 = arith.constant 0.001953125 : f32
    %5 = vector.broadcast %cst_4 : f32 to vector<16x1xf32>
    %6 = arith.mulf %4, %5 : vector<16x1xf32>
    %7 = vector.broadcast %6 : vector<16x1xf32> to vector<16x512xf32>
    %8 = arith.subf %2, %7 : vector<16x512xf32>
    %9 = arith.mulf %8, %8 : vector<16x512xf32>
    %cst_5 = arith.constant dense<0.000000e+00> : vector<16xf32>
    %10 = vector.multi_reduction <add>, %9, %cst_5 [1] : vector<16x512xf32> to vector<16xf32>
    %11 = vector.shape_cast %10 : vector<16xf32> to vector<16x1xf32>
    %cst_6 = arith.constant 0.001953125 : f32
    %12 = vector.broadcast %cst_6 : f32 to vector<16x1xf32>
    %13 = arith.mulf %11, %12 : vector<16x1xf32>
    %c0_7 = arith.constant 0 : index
    %c0_8 = arith.constant 0 : index
    %14 = vector.load %arg3[%c0_7, %c0_8] : memref<16x1xf32, #tpu.memory_space<vmem>>, vector<16x1xf32>
    %cst_9 = arith.constant 9.99999974E-6 : f32
    %15 = vector.broadcast %cst_9 : f32 to vector<16x1xf32>
    %16 = arith.addf %13, %15 : vector<16x1xf32>
    %17 = math.rsqrt %16 : vector<16x1xf32>
    %18 = arith.mulf %14, %17 : vector<16x1xf32>
    %19 = vector.broadcast %18 : vector<16x1xf32> to vector<16x512xf32>
    %20 = arith.mulf %8, %19 : vector<16x512xf32>
    %c0_10 = arith.constant 0 : index
    %c0_11 = arith.constant 0 : index
    %21 = vector.load %arg4[%c0_10, %c0_11] : memref<16x1xf32, #tpu.memory_space<vmem>>, vector<16x1xf32>
    %22 = vector.broadcast %21 : vector<16x1xf32> to vector<16x512xf32>
    %23 = arith.addf %20, %22 : vector<16x512xf32>
    %cst_12 = arith.constant 0.000000e+00 : f32
    %24 = vector.broadcast %cst_12 : f32 to vector<16x512xf32>
    %25 = arith.cmpf ogt, %23, %24 : vector<16x512xf32>
    %cst_13 = arith.constant 2.000000e-01 : f32
    %26 = vector.broadcast %cst_13 : f32 to vector<16x512xf32>
    %27 = arith.mulf %26, %23 : vector<16x512xf32>
    %28 = arith.select %25, %23, %27 : vector<16x512xi1>, vector<16x512xf32>
    %29 = arith.truncf %28 : vector<16x512xf32> to vector<16x512xbf16>
    %c0_14 = arith.constant 0 : index
    %c0_15 = arith.constant 0 : index
    %30 = vector.load %arg5[%c0_14, %c0_15] : memref<16x512xbf16, #tpu.memory_space<vmem>>, vector<16x512xbf16>
    tpu.vector_store %arg5[%c0_14, %c0_15], %29 {strides = array<i32>} : memref<16x512xbf16, #tpu.memory_space<vmem>>, vector<16x512xbf16>,
    return
  }
  func.func @transform_0(%arg0: i32) -> (i32, i32) {
    %c0_i32 = arith.constant 0 : i32
    %c0_i32_0 = arith.constant 0 : i32
    %c0_i32_1 = arith.constant 0 : i32
    return %c0_i32, %c0_i32_0 : i32, i32
  }
  func.func @transform_1(%arg0: i32) -> (i32, i32) {
    %c0_i32 = arith.constant 0 : i32
    %c0_i32_0 = arith.constant 0 : i32
    %c0_i32_1 = arith.constant 0 : i32
    return %c0_i32, %c0_i32_0 : i32, i32
  }
  func.func @transform_2(%arg0: i32) -> (i32, i32) {
    %c0_i32 = arith.constant 0 : i32
    %c0_i32_0 = arith.constant 0 : i32
    %c0_i32_1 = arith.constant 0 : i32
    return %c0_i32, %c0_i32_0 : i32, i32
  }
  func.func @transform_3(%arg0: i32) -> (i32, i32) {
    %c0_i32 = arith.constant 0 : i32
    %c0_i32_0 = arith.constant 0 : i32
    %c0_i32_1 = arith.constant 0 : i32
    return %c0_i32, %c0_i32_0 : i32, i32
  }
  func.func @transform_4(%arg0: i32) -> (i32, i32) {
    %c0_i32 = arith.constant 0 : i32
    %c0_i32_0 = arith.constant 0 : i32
    %c0_i32_1 = arith.constant 0 : i32
    return %c0_i32, %c0_i32_0 : i32, i32
  }
}

module attributes {stable_mosaic.version = 11 : i64} {
  func.func @_conv_bn_lrelu_kernel(%arg0: i32, %arg1: memref<32x256xbf16, #tpu.memory_space<vmem>>, %arg2: memref<256x128xbf16, #tpu.memory_space<vmem>>, %arg3: memref<32x1xf32, #tpu.memory_space<vmem>>, %arg4: memref<32x1xf32, #tpu.memory_space<vmem>>, %arg5: memref<32x128xbf16, #tpu.memory_space<vmem>>) attributes {dimension_semantics = [#tpu.dimension_semantics<arbitrary>], iteration_bounds = array<i64: 1>, scalar_prefetch = 0 : i64, scratch_operands = 0 : i64, tpu.core_type = #tpu.core_type<tc>, window_params = [{pipeline_mode = #tpu.pipeline_mode<synchronous>, transform_indices = @transform_0, window_bounds = array<i64: 32, 256>}, {pipeline_mode = #tpu.pipeline_mode<synchronous>, transform_indices = @transform_1, window_bounds = array<i64: 256, 128>}, {pipeline_mode = #tpu.pipeline_mode<synchronous>, transform_indices = @transform_2, window_bounds = array<i64: 32, 1>}, {pipeline_mode = #tpu.pipeline_mode<synchronous>, transform_indices = @transform_3, window_bounds = array<i64: 32, 1>}, {pipeline_mode = #tpu.pipeline_mode<synchronous>, transform_indices = @transform_4, window_bounds = array<i64: 32, 128>}]} {
    %c0 = arith.constant 0 : index
    %c0_0 = arith.constant 0 : index
    %0 = vector.load %arg1[%c0, %c0_0] : memref<32x256xbf16, #tpu.memory_space<vmem>>, vector<32x256xbf16>
    %c0_1 = arith.constant 0 : index
    %c0_2 = arith.constant 0 : index
    %1 = vector.load %arg2[%c0_1, %c0_2] : memref<256x128xbf16, #tpu.memory_space<vmem>>, vector<256x128xbf16>
    %cst = arith.constant dense<0.000000e+00> : vector<32x128xf32>
    %2 = tpu.matmul %0, %1, %cst {dimension_numbers = #tpu.dot_dimension_numbers<[1], [0], [0], [1], [0, 0, 1, 1], [], []>} : vector<32x256xbf16>, vector<256x128xbf16>, vector<32x128xf32> -> vector<32x128xf32>
    %cst_3 = arith.constant dense<0.000000e+00> : vector<32xf32>
    %3 = vector.multi_reduction <add>, %2, %cst_3 [1] : vector<32x128xf32> to vector<32xf32>
    %4 = vector.shape_cast %3 : vector<32xf32> to vector<32x1xf32>
    %cst_4 = arith.constant 7.812500e-03 : f32
    %5 = vector.broadcast %cst_4 : f32 to vector<32x1xf32>
    %6 = arith.mulf %4, %5 : vector<32x1xf32>
    %7 = vector.broadcast %6 : vector<32x1xf32> to vector<32x128xf32>
    %8 = arith.subf %2, %7 : vector<32x128xf32>
    %9 = arith.mulf %8, %8 : vector<32x128xf32>
    %cst_5 = arith.constant dense<0.000000e+00> : vector<32xf32>
    %10 = vector.multi_reduction <add>, %9, %cst_5 [1] : vector<32x128xf32> to vector<32xf32>
    %11 = vector.shape_cast %10 : vector<32xf32> to vector<32x1xf32>
    %cst_6 = arith.constant 7.812500e-03 : f32
    %12 = vector.broadcast %cst_6 : f32 to vector<32x1xf32>
    %13 = arith.mulf %11, %12 : vector<32x1xf32>
    %c0_7 = arith.constant 0 : index
    %c0_8 = arith.constant 0 : index
    %14 = vector.load %arg3[%c0_7, %c0_8] : memref<32x1xf32, #tpu.memory_space<vmem>>, vector<32x1xf32>
    %cst_9 = arith.constant 9.99999974E-6 : f32
    %15 = vector.broadcast %cst_9 : f32 to vector<32x1xf32>
    %16 = arith.addf %13, %15 : vector<32x1xf32>
    %17 = math.rsqrt %16 : vector<32x1xf32>
    %18 = arith.mulf %14, %17 : vector<32x1xf32>
    %19 = vector.broadcast %18 : vector<32x1xf32> to vector<32x128xf32>
    %20 = arith.mulf %8, %19 : vector<32x128xf32>
    %c0_10 = arith.constant 0 : index
    %c0_11 = arith.constant 0 : index
    %21 = vector.load %arg4[%c0_10, %c0_11] : memref<32x1xf32, #tpu.memory_space<vmem>>, vector<32x1xf32>
    %22 = vector.broadcast %21 : vector<32x1xf32> to vector<32x128xf32>
    %23 = arith.addf %20, %22 : vector<32x128xf32>
    %cst_12 = arith.constant 0.000000e+00 : f32
    %24 = vector.broadcast %cst_12 : f32 to vector<32x128xf32>
    %25 = arith.cmpf ogt, %23, %24 : vector<32x128xf32>
    %cst_13 = arith.constant 2.000000e-01 : f32
    %26 = vector.broadcast %cst_13 : f32 to vector<32x128xf32>
    %27 = arith.mulf %26, %23 : vector<32x128xf32>
    %28 = arith.select %25, %23, %27 : vector<32x128xi1>, vector<32x128xf32>
    %29 = arith.truncf %28 : vector<32x128xf32> to vector<32x128xbf16>
    %c0_14 = arith.constant 0 : index
    %c0_15 = arith.constant 0 : index
    %30 = vector.load %arg5[%c0_14, %c0_15] : memref<32x128xbf16, #tpu.memory_space<vmem>>, vector<32x128xbf16>
    tpu.vector_store %arg5[%c0_14, %c0_15], %29 {strides = array<i32>} : memref<32x128xbf16, #tpu.memory_space<vmem>>, vector<32x128xbf16>,
    return
  }
  func.func @transform_0(%arg0: i32) -> (i32, i32) {
    %c0_i32 = arith.constant 0 : i32
    %c0_i32_0 = arith.constant 0 : i32
    %c0_i32_1 = arith.constant 0 : i32
    return %c0_i32, %c0_i32_0 : i32, i32
  }
  func.func @transform_1(%arg0: i32) -> (i32, i32) {
    %c0_i32 = arith.constant 0 : i32
    %c0_i32_0 = arith.constant 0 : i32
    %c0_i32_1 = arith.constant 0 : i32
    return %c0_i32, %c0_i32_0 : i32, i32
  }
  func.func @transform_2(%arg0: i32) -> (i32, i32) {
    %c0_i32 = arith.constant 0 : i32
    %c0_i32_0 = arith.constant 0 : i32
    %c0_i32_1 = arith.constant 0 : i32
    return %c0_i32, %c0_i32_0 : i32, i32
  }
  func.func @transform_3(%arg0: i32) -> (i32, i32) {
    %c0_i32 = arith.constant 0 : i32
    %c0_i32_0 = arith.constant 0 : i32
    %c0_i32_1 = arith.constant 0 : i32
    return %c0_i32, %c0_i32_0 : i32, i32
  }
  func.func @transform_4(%arg0: i32) -> (i32, i32) {
    %c0_i32 = arith.constant 0 : i32
    %c0_i32_0 = arith.constant 0 : i32
    %c0_i32_1 = arith.constant 0 : i32
    return %c0_i32, %c0_i32_0 : i32, i32
  }
}

module attributes {stable_mosaic.version = 11 : i64} {
  func.func @_conv_bn_lrelu_head_kernel(%arg0: i32, %arg1: memref<64x512xbf16, #tpu.memory_space<vmem>>, %arg2: memref<512x32xbf16, #tpu.memory_space<vmem>>, %arg3: memref<64x1xf32, #tpu.memory_space<vmem>>, %arg4: memref<64x1xf32, #tpu.memory_space<vmem>>, %arg5: memref<64x16xf32, #tpu.memory_space<vmem>>, %arg6: memref<1x2xf32, #tpu.memory_space<vmem>>) attributes {dimension_semantics = [#tpu.dimension_semantics<arbitrary>], iteration_bounds = array<i64: 1>, scalar_prefetch = 0 : i64, scratch_operands = 0 : i64, tpu.core_type = #tpu.core_type<tc>, window_params = [{pipeline_mode = #tpu.pipeline_mode<synchronous>, transform_indices = @transform_0, window_bounds = array<i64: 64, 512>}, {pipeline_mode = #tpu.pipeline_mode<synchronous>, transform_indices = @transform_1, window_bounds = array<i64: 512, 32>}, {pipeline_mode = #tpu.pipeline_mode<synchronous>, transform_indices = @transform_2, window_bounds = array<i64: 64, 1>}, {pipeline_mode = #tpu.pipeline_mode<synchronous>, transform_indices = @transform_3, window_bounds = array<i64: 64, 1>}, {pipeline_mode = #tpu.pipeline_mode<synchronous>, transform_indices = @transform_4, window_bounds = array<i64: 64, 16>}, {pipeline_mode = #tpu.pipeline_mode<synchronous>, transform_indices = @transform_5, window_bounds = array<i64: 1, 2>}]} {
    %c0 = arith.constant 0 : index
    %c0_0 = arith.constant 0 : index
    %0 = vector.load %arg1[%c0, %c0_0] : memref<64x512xbf16, #tpu.memory_space<vmem>>, vector<64x512xbf16>
    %c0_1 = arith.constant 0 : index
    %c0_2 = arith.constant 0 : index
    %1 = vector.load %arg2[%c0_1, %c0_2] : memref<512x32xbf16, #tpu.memory_space<vmem>>, vector<512x32xbf16>
    %cst = arith.constant dense<0.000000e+00> : vector<64x32xf32>
    %2 = tpu.matmul %0, %1, %cst {dimension_numbers = #tpu.dot_dimension_numbers<[1], [0], [0], [1], [0, 0, 1, 1], [], []>} : vector<64x512xbf16>, vector<512x32xbf16>, vector<64x32xf32> -> vector<64x32xf32>
    %cst_3 = arith.constant dense<0.000000e+00> : vector<64xf32>
    %3 = vector.multi_reduction <add>, %2, %cst_3 [1] : vector<64x32xf32> to vector<64xf32>
    %4 = vector.shape_cast %3 : vector<64xf32> to vector<64x1xf32>
    %cst_4 = arith.constant 3.125000e-02 : f32
    %5 = vector.broadcast %cst_4 : f32 to vector<64x1xf32>
    %6 = arith.mulf %4, %5 : vector<64x1xf32>
    %7 = vector.broadcast %6 : vector<64x1xf32> to vector<64x32xf32>
    %8 = arith.subf %2, %7 : vector<64x32xf32>
    %9 = arith.mulf %8, %8 : vector<64x32xf32>
    %cst_5 = arith.constant dense<0.000000e+00> : vector<64xf32>
    %10 = vector.multi_reduction <add>, %9, %cst_5 [1] : vector<64x32xf32> to vector<64xf32>
    %11 = vector.shape_cast %10 : vector<64xf32> to vector<64x1xf32>
    %cst_6 = arith.constant 3.125000e-02 : f32
    %12 = vector.broadcast %cst_6 : f32 to vector<64x1xf32>
    %13 = arith.mulf %11, %12 : vector<64x1xf32>
    %c0_7 = arith.constant 0 : index
    %c0_8 = arith.constant 0 : index
    %14 = vector.load %arg3[%c0_7, %c0_8] : memref<64x1xf32, #tpu.memory_space<vmem>>, vector<64x1xf32>
    %cst_9 = arith.constant 9.99999974E-6 : f32
    %15 = vector.broadcast %cst_9 : f32 to vector<64x1xf32>
    %16 = arith.addf %13, %15 : vector<64x1xf32>
    %17 = math.rsqrt %16 : vector<64x1xf32>
    %18 = arith.mulf %14, %17 : vector<64x1xf32>
    %19 = vector.broadcast %18 : vector<64x1xf32> to vector<64x32xf32>
    %20 = arith.mulf %8, %19 : vector<64x32xf32>
    %c0_10 = arith.constant 0 : index
    %c0_11 = arith.constant 0 : index
    %21 = vector.load %arg4[%c0_10, %c0_11] : memref<64x1xf32, #tpu.memory_space<vmem>>, vector<64x1xf32>
    %22 = vector.broadcast %21 : vector<64x1xf32> to vector<64x32xf32>
    %23 = arith.addf %20, %22 : vector<64x32xf32>
    %cst_12 = arith.constant 0.000000e+00 : f32
    %24 = vector.broadcast %cst_12 : f32 to vector<64x32xf32>
    %25 = arith.cmpf ogt, %23, %24 : vector<64x32xf32>
    %cst_13 = arith.constant 2.000000e-01 : f32
    %26 = vector.broadcast %cst_13 : f32 to vector<64x32xf32>
    %27 = arith.mulf %26, %23 : vector<64x32xf32>
    %28 = arith.select %25, %23, %27 : vector<64x32xi1>, vector<64x32xf32>
    %c0_14 = arith.constant 0 : index
    %c0_15 = arith.constant 0 : index
    %29 = vector.load %arg5[%c0_14, %c0_15] : memref<64x16xf32, #tpu.memory_space<vmem>>, vector<64x16xf32>
    %30 = vector.extract_strided_slice %28 {offsets = [0, 0], sizes = [64, 16], strides = [1, 1]} : vector<64x32xf32> to vector<64x16xf32>
    %31 = arith.mulf %30, %29 : vector<64x16xf32>
    %cst_16 = arith.constant dense<0.000000e+00> : vector<64xf32>
    %32 = vector.multi_reduction <add>, %31, %cst_16 [1] : vector<64x16xf32> to vector<64xf32>
    %33 = vector.shape_cast %32 : vector<64xf32> to vector<64x1xf32>
    %cst_17 = arith.constant dense<0.000000e+00> : vector<1xf32>
    %34 = vector.multi_reduction <add>, %33, %cst_17 [0] : vector<64x1xf32> to vector<1xf32>
    %35 = vector.shape_cast %34 : vector<1xf32> to vector<1x1xf32>
    %cst_18 = arith.constant 0.000000e+00 : f32
    %36 = vector.broadcast %cst_18 : f32 to vector<1x1xf32>
    %37 = arith.subf %36, %35 : vector<1x1xf32>
    %38 = math.exp %37 : vector<1x1xf32>
    %cst_19 = arith.constant 1.000000e+00 : f32
    %39 = vector.broadcast %cst_19 : f32 to vector<1x1xf32>
    %40 = arith.addf %39, %38 : vector<1x1xf32>
    %cst_20 = arith.constant 1.000000e+00 : f32
    %41 = vector.broadcast %cst_20 : f32 to vector<1x1xf32>
    %42 = arith.divf %41, %40 : vector<1x1xf32>
    %43 = vector.extract_strided_slice %28 {offsets = [0, 16], sizes = [64, 16], strides = [1, 1]} : vector<64x32xf32> to vector<64x16xf32>
    %44 = arith.mulf %43, %29 : vector<64x16xf32>
    %cst_21 = arith.constant dense<0.000000e+00> : vector<64xf32>
    %45 = vector.multi_reduction <add>, %44, %cst_21 [1] : vector<64x16xf32> to vector<64xf32>
    %46 = vector.shape_cast %45 : vector<64xf32> to vector<64x1xf32>
    %cst_22 = arith.constant dense<0.000000e+00> : vector<1xf32>
    %47 = vector.multi_reduction <add>, %46, %cst_22 [0] : vector<64x1xf32> to vector<1xf32>
    %48 = vector.shape_cast %47 : vector<1xf32> to vector<1x1xf32>
    %cst_23 = arith.constant 0.000000e+00 : f32
    %49 = vector.broadcast %cst_23 : f32 to vector<1x1xf32>
    %50 = arith.subf %49, %48 : vector<1x1xf32>
    %51 = math.exp %50 : vector<1x1xf32>
    %cst_24 = arith.constant 1.000000e+00 : f32
    %52 = vector.broadcast %cst_24 : f32 to vector<1x1xf32>
    %53 = arith.addf %52, %51 : vector<1x1xf32>
    %cst_25 = arith.constant 1.000000e+00 : f32
    %54 = vector.broadcast %cst_25 : f32 to vector<1x1xf32>
    %55 = arith.divf %54, %53 : vector<1x1xf32>
    %56 = tpu.concatenate %42, %55 in 1 : vector<1x1xf32>, vector<1x1xf32> -> vector<1x2xf32>
    %c0_26 = arith.constant 0 : index
    %c0_27 = arith.constant 0 : index
    %57 = vector.load %arg6[%c0_26, %c0_27] : memref<1x2xf32, #tpu.memory_space<vmem>>, vector<1x2xf32>
    tpu.vector_store %arg6[%c0_26, %c0_27], %56 {strides = array<i32>} : memref<1x2xf32, #tpu.memory_space<vmem>>, vector<1x2xf32>,
    return
  }
  func.func @transform_0(%arg0: i32) -> (i32, i32) {
    %c0_i32 = arith.constant 0 : i32
    %c0_i32_0 = arith.constant 0 : i32
    %c0_i32_1 = arith.constant 0 : i32
    return %c0_i32, %c0_i32_0 : i32, i32
  }
  func.func @transform_1(%arg0: i32) -> (i32, i32) {
    %c0_i32 = arith.constant 0 : i32
    %c0_i32_0 = arith.constant 0 : i32
    %c0_i32_1 = arith.constant 0 : i32
    return %c0_i32, %c0_i32_0 : i32, i32
  }
  func.func @transform_2(%arg0: i32) -> (i32, i32) {
    %c0_i32 = arith.constant 0 : i32
    %c0_i32_0 = arith.constant 0 : i32
    %c0_i32_1 = arith.constant 0 : i32
    return %c0_i32, %c0_i32_0 : i32, i32
  }
  func.func @transform_3(%arg0: i32) -> (i32, i32) {
    %c0_i32 = arith.constant 0 : i32
    %c0_i32_0 = arith.constant 0 : i32
    %c0_i32_1 = arith.constant 0 : i32
    return %c0_i32, %c0_i32_0 : i32, i32
  }
  func.func @transform_4(%arg0: i32) -> (i32, i32) {
    %c0_i32 = arith.constant 0 : i32
    %c0_i32_0 = arith.constant 0 : i32
    %c0_i32_1 = arith.constant 0 : i32
    return %c0_i32, %c0_i32_0 : i32, i32
  }
  func.func @transform_5(%arg0: i32) -> (i32, i32) {
    %c0_i32 = arith.constant 0 : i32
    %c0_i32_0 = arith.constant 0 : i32
    %c0_i32_1 = arith.constant 0 : i32
    return %c0_i32, %c0_i32_0 : i32, i32
  }
}

</mosaic_0001>

<bundles_post_ra>
// kernel: discriminator_forward.3
= control target key start
LH: loop header
LB: loop body
LE: loop exit
PB: predicated region body
PF: predicated region fallthrough
CT: control target
= control target key end

     0   :  { %vm49_vm0 = vcmask 1043456   ;;  %vm50_vm1 = vcmask 1044480   ;;  %v323_v1 = vmov 0   ;;  %v324_v2 = vmov 65535   ;;  %s389_s1 = inlined_call_operand.vmem [shape: bf16[9,512], index: 1, kind: input, shape index: {}]   ;;  %s390_s0 = inlined_call_operand.vmem [shape: bf16[16,9], index: 0, kind: input, shape index: {}]   ;;  %s391_s3 = inlined_call_operand.vmem [shape: f32[16,1], index: 3, kind: input, shape index: {}]   ;;  %s392_s2 = inlined_call_operand.vmem [shape: f32[16,1], index: 2, kind: input, shape index: {}]   ;;  %s393_s4 = inlined_call_operand.vmem [shape: bf16[16,512], index: 4, kind: output, shape index: {}]  }
   0x1   :  { %v312_v0 = vld [vmem:[%s389_s1 + $0x4] ss:$16 sps:$4 sm:$0x1f]   ;;  %97 = vmatprep.mubr.bf16.mxu0 %v323_v1  ;;  %140 = vmatprep.mubr.bf16.mxu1 %v323_v1  ;;  %v51_v3 = vsel %vm49_vm0, 4294967295, %v324_v2  ;;  %vm45_vm2 = vcmask 72704   ;;  %v192_v63 = vld [vmem:[%s392_s2 + $0x8] sm:$0xff] }
   0x2   :  { %311 = vset.pattern.permute.xlu1 %v323_v1  ;;  %310 = vset.pattern.permute.xlu0 %v323_v1  ;;  %v52_v4 = vsel %vm50_vm1, %v51_v3, 0  ;;  %v314_v5 = vld [vmem:[%s389_s1 + $0xc] ss:$16 sps:$4 sm:$0x1f]   ;;  %v318_v12 = vld [vmem:[%s390_s0] sm:$0xff]  }
   0x3   :  { %v57_v6 = vand.u32 %v312_v0, %v52_v4  ;;  %v316_v7 = vld [vmem:[%s389_s1] ss:$16 sps:$4 sm:$0x1f]   ;;  %v317_v8 = vld [vmem:[%s389_s1 + $0x8] ss:$16 sps:$4 sm:$0x1f]   ;;  %v63_v9 = vand.u32 %v314_v5, %v52_v4 }
   0x4   :  { %v54_v10 = vand.u32 %v316_v7, %v52_v4  ;;  %v60_v11 = vand.u32 %v317_v8, %v52_v4  ;;  %v217_v53 = vld [vmem:[%s391_s3] sm:$0xff]  ;;  %v218_v2 = vld [vmem:[%s391_s3 + $0x8] sm:$0xff] }
   0x5   :  { %65 = vmatprep.subr.bf16.mxu0 %v57_v6  ;;  %108 = vmatprep.subr.bf16.mxu1 %v63_v9  ;;  %v191_v60 = vld [vmem:[%s392_s2] sm:$0xff] }
   0x6   :  { %66 = vmatpush1.bf16.msra.mxu0 %v54_v10  ;;  %109 = vmatpush1.bf16.msra.mxu1 %v60_v11 }
   0x9   :  { %298 = vmatmul.mubr.msk.bf16.vlgmr.msra.gmra.mrb[0].mxu0 %vm45_vm2, %v318_v12  ;;  %299 = vmatmul.mubr.msk.bf16.vlgmr.msra.gmra.mrb[0].mxu1 %vm45_vm2, %v318_v12 }
  0xdc   :  { %v99_v13 = vpop.f32.mrb[0].mxu0  ;;  %v142_v14 = vpop.f32.mrb[0].mxu1 }
  0xdd   :  { %v101_v15 = vpop.f32.mrb[1].mxu0  ;;  %v144_v16 = vpop.f32.mrb[1].mxu1 }
  0xde   :  { %v151_v17 = vadd.f32 %v101_v15, %v99_v13  ;;  %v103_v18 = vpop.f32.mrb[2].mxu0  ;;  %v146_v19 = vpop.f32.mrb[2].mxu1 }
  0xdf   :  { %v105_v20 = vpop.f32.mrb[3].mxu0  ;;  %v148_v21 = vpop.f32.mrb[3].mxu1 }
  0xe0   :  { %v156_v22 = vadd.f32 %v105_v20, %v103_v18  ;;  %v152_v23 = vadd.f32 %v151_v17, %v142_v14 }
  0xe2   :  { %v157_v24 = vadd.f32 %v156_v22, %v146_v19  ;;  %v153_v25 = vadd.f32 %v152_v23, %v144_v16 }
  0xe4   :  { %v158_v26 = vadd.f32 %v157_v24, %v148_v21  ;;  %154 = vadd.xlane.f32.xlu0 %v153_v25 }
  0xe8   :  { %159 = vadd.xlane.f32.xlu0 %v158_v26 }
 0x171   :  { %v155_v27 = vpop.xlane.xlu0 %154 }
 0x172   :  { %v161_v28 = vmul.f32 0.001953125, %v155_v27 }
 0x174   :  { %v163_v29 = vsub.f32 %v99_v13, %v161_v28  ;;  %v164_v30 = vsub.f32 %v101_v15, %v161_v28  ;;  %v165_v31 = vsub.f32 %v142_v14, %v161_v28  ;;  %v166_v33 = vsub.f32 %v144_v16, %v161_v28 }
 0x175   :  { %v160_v32 = vpop.xlane.xlu0 %159 }
 0x176   :  { %v162_v34 = vmul.f32 0.001953125, %v160_v32  ;;  %v171_v35 = vmul.f32 %v163_v29, %v163_v29  ;;  %v172_v36 = vmul.f32 %v164_v30, %v164_v30  ;;  %v173_v37 = vmul.f32 %v165_v31, %v165_v31 }
 0x177   :  { %v174_v42 = vmul.f32 %v166_v33, %v166_v33 }
 0x178   :  { %v167_v38 = vsub.f32 %v103_v18, %v162_v34  ;;  %v168_v39 = vsub.f32 %v105_v20, %v162_v34  ;;  %v179_v40 = vadd.f32 %v172_v36, %v171_v35  ;;  %v169_v41 = vsub.f32 %v146_v19, %v162_v34 }
 0x179   :  { %v170_v44 = vsub.f32 %v148_v21, %v162_v34 }
 0x17a   :  { %v180_v43 = vadd.f32 %v179_v40, %v173_v37  ;;  %v175_v45 = vmul.f32 %v167_v38, %v167_v38  ;;  %v176_v46 = vmul.f32 %v168_v39, %v168_v39  ;;  %v177_v48 = vmul.f32 %v169_v41, %v169_v41 }
 0x17b   :  { %v178_v50 = vmul.f32 %v170_v44, %v170_v44 }
 0x17c   :  { %v181_v47 = vadd.f32 %v180_v43, %v174_v42  ;;  %v184_v49 = vadd.f32 %v176_v46, %v175_v45 }
 0x17e   :  { %182 = vadd.xlane.f32.xlu1 %v181_v47  ;;  %v185_v51 = vadd.f32 %v184_v49, %v177_v48 }
 0x180   :  { %v186_v52 = vadd.f32 %v185_v51, %v178_v50 }
 0x182   :  { %187 = vadd.xlane.f32.xlu1 %v186_v52 }
 0x193   :  { %221 = vperm.xlu1 %311, %v217_v53  }
 0x20b   :  { %v183_v54 = vpop.xlane.xlu1 %182 }
 0x20c   :  { %v189_v55 = vmul.f32 0.001953125, %v183_v54 }
 0x20e   :  { %v193_v56 = vadd.f32 1e-05, %v189_v55 }
 0x20f   :  { %v188_v57 = vpop.xlane.xlu1 %187 }
 0x210   :  { %319 = vrsqrt.f32 %v193_v56  ;;  %v190_v58 = vmul.f32 0.001953125, %v188_v57 }
 0x212   :  { %v194_v59 = vadd.f32 1e-05, %v190_v58 }
 0x213   :  { %v222_v3 = vpop.permute.xlu1 %221 }
 0x214   :  { %321 = vrsqrt.f32 %v194_v59 }
 0x21a   :  { %v320_v61 = vpop.eup %319 }
 0x21b   :  { %v197_v62 = vmul.f32 %v320_v61, %v191_v60 }
 0x21d   :  { %201 = vperm.xlu0 %310, %v197_v62  }
 0x21e   :  { %v322_v0 = vpop.eup %321 }
 0x21f   :  { %v198_v1 = vmul.f32 %v322_v0, %v192_v63 }
 0x221   :  { %206 = vperm.xlu1 %311, %v198_v1  }
 0x225   :  { %226 = vperm.xlu1 %311, %v218_v2  }
 0x29c   :  { %v202_v4 = vpop.permute.xlu0 %201 }
 0x29d   :  { %v209_v5 = vmul.f32 %v202_v4, %v163_v29  ;;  %v210_v6 = vmul.f32 %v202_v4, %v164_v30  ;;  %v211_v7 = vmul.f32 %v202_v4, %v165_v31  ;;  %v212_v8 = vmul.f32 %v202_v4, %v166_v33 }
 0x29f   :  { %v229_v9 = vadd.f32 %v222_v3, %v209_v5  ;;  %v230_v10 = vadd.f32 %v222_v3, %v210_v6  ;;  %v231_v11 = vadd.f32 %v222_v3, %v211_v7  ;;  %v232_v12 = vadd.f32 %v222_v3, %v212_v8 }
 0x2a0   :  { %v207_v13 = vpop.permute.xlu1 %206 }
 0x2a1   :  { %vm237_vm3 = vcmp.gt.f32.partialorder %v229_v9, 0.0  ;;  %vm238_vm4 = vcmp.gt.f32.partialorder %v230_v10, 0.0  ;;  %vm239_vm5 = vcmp.gt.f32.partialorder %v231_v11, 0.0  ;;  %vm240_vm6 = vcmp.gt.f32.partialorder %v232_v12, 0.0 }
 0x2a2   :  { %v245_v14 = vmul.f32 0.2, %v229_v9  ;;  %v246_v15 = vmul.f32 0.2, %v230_v10  ;;  %v247_v16 = vmul.f32 0.2, %v231_v11  ;;  %v213_v18 = vmul.f32 %v207_v13, %v167_v38 }
 0x2a3   :  { %v248_v17 = vmul.f32 0.2, %v232_v12  ;;  %v214_v19 = vmul.f32 %v207_v13, %v168_v39  ;;  %v215_v20 = vmul.f32 %v207_v13, %v169_v41  ;;  %v216_v24 = vmul.f32 %v207_v13, %v170_v44 }
 0x2a4   :  { %v253_v21 = vsel %vm237_vm3, %v229_v9, %v245_v14  ;;  %v254_v22 = vsel %vm238_vm4, %v230_v10, %v246_v15  ;;  %v255_v23 = vsel %vm239_vm5, %v231_v11, %v247_v16  ;;  %v227_v25 = vpop.permute.xlu1 %226 }
 0x2a5   :  { %v256_v26 = vsel %vm240_vm6, %v232_v12, %v248_v17  ;;  %v304_v27 = vpack.c.bf16 %v254_v22, %v253_v21  ;;  %v233_v28 = vadd.f32 %v227_v25, %v213_v18  ;;  %v234_v29 = vadd.f32 %v227_v25, %v214_v19 }
 0x2a6   :  { %v305_v30 = vpack.c.bf16 %v256_v26, %v255_v23  ;;  %v235_v31 = vadd.f32 %v227_v25, %v215_v20  ;;  %v236_v32 = vadd.f32 %v227_v25, %v216_v24 }
 0x2a7   :  { %285 = vst [vmem:[%s393_s4] sm:$0xff] %v304_v27  ;;  %vm241_vm7 = vcmp.gt.f32.partialorder %v233_v28, 0.0  ;;  %vm242_vm8 = vcmp.gt.f32.partialorder %v234_v29, 0.0  ;;  %v249_v33 = vmul.f32 0.2, %v233_v28  ;;  %v250_v34 = vmul.f32 0.2, %v234_v29 }
 0x2a8   :  { %286 = vst [vmem:[%s393_s4 + $0x8] sm:$0xff] %v305_v30  ;;  %vm243_vm9 = vcmp.gt.f32.partialorder %v235_v31, 0.0  ;;  %vm244_vm10 = vcmp.gt.f32.partialorder %v236_v32, 0.0  ;;  %v251_v35 = vmul.f32 0.2, %v235_v31 }
 0x2a9   :  { %v252_v36 = vmul.f32 0.2, %v236_v32  ;;  %v257_v37 = vsel %vm241_vm7, %v233_v28, %v249_v33  ;;  %v258_v38 = vsel %vm242_vm8, %v234_v29, %v250_v34 }
 0x2aa   :  { %v259_v39 = vsel %vm243_vm9, %v235_v31, %v251_v35  ;;  %v306_v41 = vpack.c.bf16 %v258_v38, %v257_v37 }
 0x2ab   :  { %v260_v40 = vsel %vm244_vm10, %v236_v32, %v252_v36 }
 0x2ac   :  { %v307_v42 = vpack.c.bf16 %v260_v40, %v259_v39  ;;  %287 = vst [vmem:[%s393_s4 + $0x10] sm:$0xff] %v306_v41 }
 0x2ae   :  { %288 = vst [vmem:[%s393_s4 + $0x18] sm:$0xff] %v307_v42 }

// kernel: discriminator_forward.4
= control target key start
LH: loop header
LB: loop body
LE: loop exit
PB: predicated region body
PF: predicated region fallthrough
CT: control target
= control target key end

     0   :  { %v471_v48 = vmov 0   ;;  %s607_s1 = inlined_call_operand.vmem [shape: bf16[256,128], index: 1, kind: input, shape index: {}]   ;;  %s608_s0 = inlined_call_operand.vmem [shape: bf16[32,256], index: 0, kind: input, shape index: {}]   ;;  %s609_s3 = inlined_call_operand.vmem [shape: f32[32,1], index: 3, kind: input, shape index: {}]   ;;  %s610_s2 = inlined_call_operand.vmem [shape: f32[32,1], index: 2, kind: input, shape index: {}]   ;;  %s611_s4 = inlined_call_operand.vmem [shape: bf16[32,128], index: 4, kind: output, shape index: {}]  }
   0x1   :  { %v441_v0 = vld [vmem:[%s607_s1 + $0x40] sm:$0xff]   ;;  %v443_v2 = vld [vmem:[%s607_s1 + $0x48] sm:$0xff]   ;;  %v445_v4 = vld [vmem:[%s607_s1 + $0x50] sm:$0xff]   ;;  %440 = vset.pattern.permute.xlu1 %v471_v48  ;;  %439 = vset.pattern.permute.xlu0 %v471_v48 }
   0x2   :  { %v442_v1 = vld [vmem:[%s607_s1] sm:$0xff]   ;;  %394 = vmatprep.subr.bf16.mxu0 %v441_v0  ;;  %422 = vmatprep.subr.bf16.mxu1 %v441_v0  ;;  %v444_v3 = vld [vmem:[%s607_s1 + $0x8] sm:$0xff]   ;;  %v446_v5 = vld [vmem:[%s607_s1 + $0x10] sm:$0xff]  }
   0x3   :  { %395 = vmatpush3.bf16.msra.mxu0 %v442_v1  ;;  %430 = vmatpush3.bf16.msra.mxu1 %v442_v1  ;;  %v447_v6 = vld [vmem:[%s607_s1 + $0x58] sm:$0xff]   ;;  %v449_v8 = vld [vmem:[%s607_s1 + $0x60] sm:$0xff]   ;;  %v451_v10 = vld [vmem:[%s607_s1 + $0x68] sm:$0xff]  }
   0x4   :  { %396 = vmatprep.subr.bf16.mxu0 %v443_v2  ;;  %423 = vmatprep.subr.bf16.mxu1 %v443_v2  ;;  %v448_v7 = vld [vmem:[%s607_s1 + $0x18] sm:$0xff]   ;;  %v450_v9 = vld [vmem:[%s607_s1 + $0x20] sm:$0xff]   ;;  %v452_v13 = vld [vmem:[%s607_s1 + $0x28] sm:$0xff]  }
   0x5   :  { %v459_v11 = vld [vmem:[%s608_s0 + $0x4] ss:$8 sps:$4 sm:$0xff]   ;;  %v462_v12 = vld [vmem:[%s608_s0 + $0x14] ss:$8 sps:$4 sm:$0xff]   ;;  %v457_v18 = vld [vmem:[%s608_s0] ss:$8 sps:$4 sm:$0xff]  }
   0x6   :  { %v453_v14 = vld [vmem:[%s607_s1 + $0x70] sm:$0xff]   ;;  %202 = vmatprep.mubr.bf16.mxu0 %v459_v11  ;;  %210 = vmatprep.mubr.bf16.mxu1 %v462_v12  ;;  %v455_v16 = vld [vmem:[%s607_s1 + $0x78] sm:$0xff]   ;;  %v291_v49 = vld [vmem:[%s609_s3] sm:$0xff] }
   0x7   :  { %397 = vmatpush3.bf16.msra.mxu0 %v444_v3  ;;  %431 = vmatpush3.bf16.msra.mxu1 %v444_v3  ;;  %v454_v15 = vld [vmem:[%s607_s1 + $0x30] sm:$0xff]   ;;  %v456_v17 = vld [vmem:[%s607_s1 + $0x38] sm:$0xff]   ;;  %v292_v50 = vld [vmem:[%s609_s3 + $0x8] sm:$0xff] }
   0x8   :  { %398 = vmatprep.subr.bf16.mxu0 %v445_v4  ;;  %424 = vmatprep.subr.bf16.mxu1 %v445_v4  ;;  %v460_v19 = vld [vmem:[%s608_s0 + $0x10] ss:$8 sps:$4 sm:$0xff]   ;;  %v251_v0 = vld [vmem:[%s610_s2] sm:$0xff] }
   0x9   :  { %v293_v51 = vld [vmem:[%s609_s3 + $0x10] sm:$0xff]  ;;  %v294_v12 = vld [vmem:[%s609_s3 + $0x18] sm:$0xff] }
   0xa   :  { %v253_v3 = vld [vmem:[%s610_s2 + $0x10] sm:$0xff] }
   0xb   :  { %399 = vmatpush3.bf16.msra.mxu0 %v446_v5  ;;  %432 = vmatpush3.bf16.msra.mxu1 %v446_v5 }
   0xc   :  { %400 = vmatprep.subr.bf16.mxu0 %v447_v6  ;;  %425 = vmatprep.subr.bf16.mxu1 %v447_v6 }
   0xf   :  { %401 = vmatpush3.bf16.msra.mxu0 %v448_v7  ;;  %433 = vmatpush3.bf16.msra.mxu1 %v448_v7  ;;  %v252_v7 = vld [vmem:[%s610_s2 + $0x8] sm:$0xff] }
  0x10   :  { %402 = vmatprep.subr.bf16.mxu0 %v449_v8  ;;  %426 = vmatprep.subr.bf16.mxu1 %v449_v8 }
  0x13   :  { %403 = vmatpush3.bf16.msra.mxu0 %v450_v9  ;;  %434 = vmatpush3.bf16.msra.mxu1 %v450_v9 }
  0x14   :  { %404 = vmatprep.subr.bf16.mxu0 %v451_v10  ;;  %427 = vmatprep.subr.bf16.mxu1 %v451_v10  ;;  %v254_v10 = vld [vmem:[%s610_s2 + $0x18] sm:$0xff] }
  0x17   :  { %405 = vmatpush3.bf16.msra.mxu0 %v452_v13  ;;  %435 = vmatpush3.bf16.msra.mxu1 %v452_v13 }
  0x18   :  { %406 = vmatprep.subr.bf16.mxu0 %v453_v14  ;;  %428 = vmatprep.subr.bf16.mxu1 %v453_v14 }
  0x1b   :  { %407 = vmatpush3.bf16.msra.mxu0 %v454_v15  ;;  %436 = vmatpush3.bf16.msra.mxu1 %v454_v15 }
  0x1c   :  { %408 = vmatprep.subr.bf16.mxu0 %v455_v16  ;;  %429 = vmatprep.subr.bf16.mxu1 %v455_v16 }
  0x1f   :  { %409 = vmatpush3.bf16.msra.mxu0 %v456_v17  ;;  %437 = vmatpush3.bf16.msra.mxu1 %v456_v17 }
  0x22   :  { %203 = vmatmul.mubr.bf16.vlgmr.msra.gmra.mrb[0].mxu0 %v457_v18  ;;  %211 = vmatmul.mubr.bf16.vlgmr.msra.gmra.mrb[0].mxu1 %v460_v19 }
  0xf5   :  { %v410_v20 = vpop.f32.mrb[0].mxu0  ;;  %v416_v21 = vpop.f32.mrb[0].mxu1 }
  0xf6   :  { %v411_v22 = vpop.f32.mrb[1].mxu0  ;;  %v417_v23 = vpop.f32.mrb[1].mxu1 }
  0xf7   :  { %v412_v24 = vadd.f32 %v411_v22, %v410_v20  ;;  %v418_v25 = vadd.f32 %v417_v23, %v416_v21  ;;  %v413_v26 = vpop.f32.mrb[2].mxu0  ;;  %v419_v27 = vpop.f32.mrb[2].mxu1 }
  0xf8   :  { %v414_v28 = vpop.f32.mrb[3].mxu0  ;;  %v420_v29 = vpop.f32.mrb[3].mxu1 }
  0xf9   :  { %v415_v30 = vadd.f32 %v414_v28, %v413_v26  ;;  %v421_v31 = vadd.f32 %v420_v29, %v419_v27  ;;  %223 = vadd.xlane.f32.xlu1 %v418_v25  ;;  %219 = vadd.xlane.f32.xlu0 %v412_v24 }
  0xfd   :  { %225 = vadd.xlane.f32.xlu1 %v421_v31  ;;  %221 = vadd.xlane.f32.xlu0 %v415_v30 }
 0x186   :  { %v224_v32 = vpop.xlane.xlu1 %223  ;;  %v220_v33 = vpop.xlane.xlu0 %219 }
 0x187   :  { %v229_v34 = vmul.f32 0.0078125, %v224_v32  ;;  %v227_v35 = vmul.f32 0.0078125, %v220_v33 }
 0x189   :  { %v557_v36 = vsub.f32 %v412_v24, %v227_v35  ;;  %v559_v39 = vsub.f32 %v418_v25, %v229_v34 }
 0x18a   :  { %v226_v37 = vpop.xlane.xlu1 %225  ;;  %v222_v38 = vpop.xlane.xlu0 %221 }
 0x18b   :  { %v230_v40 = vmul.f32 0.0078125, %v226_v37  ;;  %v228_v41 = vmul.f32 0.0078125, %v222_v38  ;;  %v235_v42 = vmul.f32 %v557_v36, %v557_v36  ;;  %v237_v45 = vmul.f32 %v559_v39, %v559_v39 }
 0x18d   :  { %v563_v43 = vsub.f32 %v415_v30, %v228_v41  ;;  %239 = vadd.xlane.f32.xlu0 %v235_v42  ;;  %v565_v44 = vsub.f32 %v421_v31, %v230_v40 }
 0x18f   :  { %v236_v46 = vmul.f32 %v563_v43, %v563_v43  ;;  %v238_v47 = vmul.f32 %v565_v44, %v565_v44 }
 0x191   :  { %243 = vadd.xlane.f32.xlu0 %v237_v45  ;;  %241 = vadd.xlane.f32.xlu1 %v236_v46 }
 0x195   :  { %245 = vadd.xlane.f32.xlu1 %v238_v47 }
 0x1a6   :  { %297 = vperm.xlu1 %440, %v291_v49  }
 0x1aa   :  { %302 = vperm.xlu1 %440, %v292_v50  }
 0x1ae   :  { %307 = vperm.xlu1 %440, %v293_v51  }
 0x21a   :  { %v240_v52 = vpop.xlane.xlu0 %239 }
 0x21b   :  { %v247_v53 = vmul.f32 0.0078125, %v240_v52 }
 0x21d   :  { %v255_v54 = vadd.f32 1e-05, %v247_v53 }
 0x21e   :  { %v242_v55 = vpop.xlane.xlu1 %241  ;;  %v244_v56 = vpop.xlane.xlu0 %243 }
 0x21f   :  { %463 = vrsqrt.f32 %v255_v54  ;;  %v248_v57 = vmul.f32 0.0078125, %v242_v55  ;;  %v249_v58 = vmul.f32 0.0078125, %v244_v56 }
 0x221   :  { %v257_v59 = vadd.f32 1e-05, %v249_v58  ;;  %v256_v60 = vadd.f32 1e-05, %v248_v57 }
 0x222   :  { %v246_v61 = vpop.xlane.xlu1 %245 }
 0x223   :  { %v250_v62 = vmul.f32 0.0078125, %v246_v61  ;;  %465 = vrsqrt.f32 %v257_v59 }
 0x224   :  { %467 = vrsqrt.f32 %v256_v60 }
 0x225   :  { %v258_v63 = vadd.f32 1e-05, %v250_v62 }
 0x226   :  { %v298_v13 = vpop.permute.xlu1 %297 }
 0x227   :  { %469 = vrsqrt.f32 %v258_v63 }
 0x229   :  { %v464_v1 = vpop.eup %463 }
 0x22a   :  { %v263_v2 = vmul.f32 %v464_v1, %v251_v0  ;;  %v303_v14 = vpop.permute.xlu1 %302 }
 0x22c   :  { %269 = vperm.xlu0 %439, %v263_v2  }
 0x22d   :  { %v466_v4 = vpop.eup %465 }
 0x22e   :  { %v265_v5 = vmul.f32 %v466_v4, %v253_v3  ;;  %v468_v6 = vpop.eup %467  ;;  %v308_v15 = vpop.permute.xlu1 %307 }
 0x22f   :  { %v264_v8 = vmul.f32 %v468_v6, %v252_v7 }
 0x230   :  { %279 = vperm.xlu1 %440, %v265_v5  }
 0x231   :  { %v470_v9 = vpop.eup %469 }
 0x232   :  { %v266_v11 = vmul.f32 %v470_v9, %v254_v10 }
 0x234   :  { %274 = vperm.xlu1 %440, %v264_v8  }
 0x238   :  { %284 = vperm.xlu1 %440, %v266_v11  }
 0x23c   :  { %312 = vperm.xlu1 %440, %v294_v12  }
 0x2ab   :  { %v270_v16 = vpop.permute.xlu0 %269 }
 0x2ac   :  { %v287_v17 = vmul.f32 %v270_v16, %v557_v36 }
 0x2ae   :  { %v315_v19 = vadd.f32 %v298_v13, %v287_v17 }
 0x2af   :  { %v280_v18 = vpop.permute.xlu1 %279 }
 0x2b0   :  { %v289_v21 = vmul.f32 %v280_v18, %v559_v39  ;;  %v323_v23 = vmul.f32 0.2, %v315_v19  ;;  %vm319_vm0 = vcmp.gt.f32.partialorder %v315_v19, 0.0 }
 0x2b2   :  { %v317_v26 = vadd.f32 %v308_v15, %v289_v21  ;;  %v327_v28 = vsel %vm319_vm0, %v315_v19, %v323_v23 }
 0x2b3   :  { %v275_v20 = vpop.permute.xlu1 %274 }
 0x2b4   :  { %v288_v22 = vmul.f32 %v275_v20, %v563_v43  ;;  %v325_v33 = vmul.f32 0.2, %v317_v26  ;;  %vm321_vm2 = vcmp.gt.f32.partialorder %v317_v26, 0.0 }
 0x2b6   :  { %v316_v24 = vadd.f32 %v303_v14, %v288_v22  ;;  %v329_v36 = vsel %vm321_vm2, %v317_v26, %v325_v33 }
 0x2b7   :  { %v285_v25 = vpop.permute.xlu1 %284 }
 0x2b8   :  { %vm320_vm1 = vcmp.gt.f32.partialorder %v316_v24, 0.0  ;;  %v324_v27 = vmul.f32 0.2, %v316_v24  ;;  %v290_v30 = vmul.f32 %v285_v25, %v565_v44 }
 0x2ba   :  { %v328_v29 = vsel %vm320_vm1, %v316_v24, %v324_v27 }
 0x2bb   :  { %v386_v31 = vpack.c.bf16 %v328_v29, %v327_v28  ;;  %v313_v32 = vpop.permute.xlu1 %312 }
 0x2bc   :  { %v318_v34 = vadd.f32 %v313_v32, %v290_v30 }
 0x2bd   :  { %387 = vst [vmem:[%s611_s4] sm:$0xff] %v386_v31  }
 0x2be   :  { %vm322_vm3 = vcmp.gt.f32.partialorder %v318_v34, 0.0  ;;  %v326_v35 = vmul.f32 0.2, %v318_v34 }
 0x2c0   :  { %v330_v37 = vsel %vm322_vm3, %v318_v34, %v326_v35 }
 0x2c1   :  { %v391_v38 = vpack.c.bf16 %v330_v37, %v329_v36 }
 0x2c3   :  { %393 = vst [vmem:[%s611_s4 + $0x8] sm:$0xff] %v391_v38  }

// kernel: discriminator_forward.5
= control target key start
LH: loop header
LB: loop body
LE: loop exit
PB: predicated region body
PF: predicated region fallthrough
CT: control target
= control target key end

     0   :  { %s1570_s0 = inlined_call_operand.vmem [shape: bf16[64,512], index: 0, kind: input, shape index: {}]   ;;  %s1571_s1 = inlined_call_operand.vmem [shape: bf16[512,32], index: 1, kind: input, shape index: {}]   ;;  %s1572_s2 = inlined_call_operand.vmem [shape: f32[64,1], index: 2, kind: input, shape index: {}]   ;;  %s1573_s3 = inlined_call_operand.vmem [shape: f32[64,1], index: 3, kind: input, shape index: {}]   ;;  %s1574_s4 = inlined_call_operand.vmem [shape: f32[64,16], index: 4, kind: input, shape index: {}]   ;;  %s1575_s5 = inlined_call_operand.hbm [shape: f32[1,2], index: 5, kind: output, shape index: {}]  }
   0x1   :  { %v1072_v0 = vld [vmem:[%s1571_s1 + $0x40] sm:$0xff]   ;;  %v1076_v4 = vld [vmem:[%s1571_s1 + $0x48] sm:$0xff]   ;;  %v1080_v8 = vld [vmem:[%s1571_s1 + $0x50] sm:$0xff]  }
   0x2   :  { %v1073_v1 = vld [vmem:[%s1571_s1 + $0xc0] sm:$0xff]   ;;  %986 = vmatprep.subr.bf16.mxu0 %v1072_v0  ;;  %v1077_v5 = vld [vmem:[%s1571_s1 + $0xc8] sm:$0xff]   ;;  %v1081_v9 = vld [vmem:[%s1571_s1 + $0xd0] sm:$0xff]  }
   0x3   :  { %v1074_v2 = vld [vmem:[%s1571_s1] sm:$0xff]   ;;  %1026 = vmatprep.subr.bf16.mxu1 %v1073_v1  ;;  %v1078_v6 = vld [vmem:[%s1571_s1 + $0x8] sm:$0xff]   ;;  %v1082_v10 = vld [vmem:[%s1571_s1 + $0x10] sm:$0xff]  }
   0x4   :  { %v1075_v3 = vld [vmem:[%s1571_s1 + $0x80] sm:$0xff]   ;;  %987 = vmatpush3.bf16.msra.mxu0 %v1074_v2  ;;  %v1079_v7 = vld [vmem:[%s1571_s1 + $0x88] sm:$0xff]   ;;  %v1083_v11 = vld [vmem:[%s1571_s1 + $0x90] sm:$0xff]  }
   0x5   :  { %1027 = vmatpush3.bf16.msra.mxu1 %v1075_v3  ;;  %988 = vmatprep.subr.bf16.mxu0 %v1076_v4  ;;  %v1084_v12 = vld [vmem:[%s1571_s1 + $0x58] sm:$0xff]   ;;  %v1088_v16 = vld [vmem:[%s1571_s1 + $0x60] sm:$0xff]   ;;  %v1092_v20 = vld [vmem:[%s1571_s1 + $0x68] sm:$0xff]  }
   0x6   :  { %1028 = vmatprep.subr.bf16.mxu1 %v1077_v5  ;;  %v1085_v13 = vld [vmem:[%s1571_s1 + $0xd8] sm:$0xff]   ;;  %v1089_v17 = vld [vmem:[%s1571_s1 + $0xe0] sm:$0xff]   ;;  %v1093_v21 = vld [vmem:[%s1571_s1 + $0xe8] sm:$0xff]  }
   0x7   :  { %v1086_v14 = vld [vmem:[%s1571_s1 + $0x18] sm:$0xff]   ;;  %v1090_v18 = vld [vmem:[%s1571_s1 + $0x20] sm:$0xff]   ;;  %v1094_v22 = vld [vmem:[%s1571_s1 + $0x28] sm:$0xff]  }
   0x8   :  { %989 = vmatpush3.bf16.msra.mxu0 %v1078_v6  ;;  %v1087_v15 = vld [vmem:[%s1571_s1 + $0x98] sm:$0xff]   ;;  %v1091_v19 = vld [vmem:[%s1571_s1 + $0xa0] sm:$0xff]   ;;  %v1095_v23 = vld [vmem:[%s1571_s1 + $0xa8] sm:$0xff]  }
   0x9   :  { %1029 = vmatpush3.bf16.msra.mxu1 %v1079_v7  ;;  %990 = vmatprep.subr.bf16.mxu0 %v1080_v8  ;;  %v1096_v24 = vld [vmem:[%s1571_s1 + $0x70] sm:$0xff]   ;;  %v1100_v28 = vld [vmem:[%s1571_s1 + $0x78] sm:$0xff]  }
   0xa   :  { %1030 = vmatprep.subr.bf16.mxu1 %v1081_v9  ;;  %v1097_v25 = vld [vmem:[%s1571_s1 + $0xf0] sm:$0xff]   ;;  %v1101_v29 = vld [vmem:[%s1571_s1 + $0xf8] sm:$0xff]  }
   0xb   :  { %v1098_v26 = vld [vmem:[%s1571_s1 + $0x30] sm:$0xff]   ;;  %v1102_v30 = vld [vmem:[%s1571_s1 + $0x38] sm:$0xff]  }
   0xc   :  { %991 = vmatpush3.bf16.msra.mxu0 %v1082_v10  ;;  %v1099_v27 = vld [vmem:[%s1571_s1 + $0xb0] sm:$0xff]   ;;  %v1103_v31 = vld [vmem:[%s1571_s1 + $0xb8] sm:$0xff]  }
   0xd   :  { %1031 = vmatpush3.bf16.msra.mxu1 %v1083_v11  ;;  %992 = vmatprep.subr.bf16.mxu0 %v1084_v12  ;;  %v1104_v32 = vld [vmem:[%s1570_s0] ss:$16 sps:$4 sm:$0xff]   ;;  %v1106_v33 = vld [vmem:[%s1570_s0 + $0x4] ss:$16 sps:$4 sm:$0xff]   ;;  %v1107_v34 = vld [vmem:[%s1570_s0 + $0x8] ss:$16 sps:$4 sm:$0xff]  }
   0xe   :  { %1032 = vmatprep.subr.bf16.mxu1 %v1085_v13  ;;  %v1109_v35 = vld [vmem:[%s1570_s0 + $0xc] ss:$16 sps:$4 sm:$0xff]   ;;  %406 = vmatprep.mubr.bf16.mxu0 %v1106_v33  ;;  %v1110_v36 = vld [vmem:[%s1570_s0 + $0x24] ss:$16 sps:$4 sm:$0xff]   ;;  %v1114_v38 = vld [vmem:[%s1570_s0 + $0x20] ss:$16 sps:$4 sm:$0xff]  }
   0xf   :  { %471 = vmatprep.mubr.bf16.mxu1 %v1109_v35  ;;  %v1112_v37 = vld [vmem:[%s1570_s0 + $0x2c] ss:$16 sps:$4 sm:$0xff]   ;;  %v1115_v39 = vld [vmem:[%s1570_s0 + $0x28] ss:$16 sps:$4 sm:$0xff]   ;;  %v1116_v40 = vld [vmem:[%s1570_s0 + $0x44] ss:$16 sps:$4 sm:$0xff]  }
  0x10   :  { %993 = vmatpush3.bf16.msra.mxu0 %v1086_v14  ;;  %v1118_v41 = vld [vmem:[%s1570_s0 + $0x4c] ss:$16 sps:$4 sm:$0xff]  }
  0x11   :  { %1033 = vmatpush3.bf16.msra.mxu1 %v1087_v15  ;;  %994 = vmatprep.subr.bf16.mxu0 %v1088_v16 }
  0x12   :  { %1034 = vmatprep.subr.bf16.mxu1 %v1089_v17 }
  0x14   :  { %995 = vmatpush3.bf16.msra.mxu0 %v1090_v18 }
  0x15   :  { %1035 = vmatpush3.bf16.msra.mxu1 %v1091_v19  ;;  %996 = vmatprep.subr.bf16.mxu0 %v1092_v20 }
  0x16   :  { %1036 = vmatprep.subr.bf16.mxu1 %v1093_v21 }
  0x18   :  { %997 = vmatpush3.bf16.msra.mxu0 %v1094_v22 }
  0x19   :  { %1037 = vmatpush3.bf16.msra.mxu1 %v1095_v23  ;;  %998 = vmatprep.subr.bf16.mxu0 %v1096_v24 }
  0x1a   :  { %1038 = vmatprep.subr.bf16.mxu1 %v1097_v25 }
  0x1c   :  { %999 = vmatpush3.bf16.msra.mxu0 %v1098_v26 }
  0x1d   :  { %1039 = vmatpush3.bf16.msra.mxu1 %v1099_v27  ;;  %1000 = vmatprep.subr.bf16.mxu0 %v1100_v28 }
  0x1e   :  { %1040 = vmatprep.subr.bf16.mxu1 %v1101_v29 }
  0x20   :  { %1001 = vmatpush3.bf16.msra.mxu0 %v1102_v30 }
  0x21   :  { %1041 = vmatpush3.bf16.msra.mxu1 %v1103_v31 }
  0x23   :  { %407 = vmatmul.mubr.bf16.vlgmr.msra.gmra.mrb[0].mxu0 %v1104_v32 }
  0x24   :  { %472 = vmatmul.mubr.bf16.vlgmr.msra.gmra.mrb[0].mxu1 %v1107_v34  ;;  %414 = vmatprep.mubr.bf16.mxu0 %v1110_v36 }
  0x25   :  { %479 = vmatprep.mubr.bf16.mxu1 %v1112_v37 }
  0x26   :  { %10 = vsyncpa [#allocation3], 0  ;;  %v1120_v42 = vld [vmem:[%s1570_s0 + $0x40] ss:$16 sps:$4 sm:$0xff]   ;;  %v1121_v43 = vld [vmem:[%s1570_s0 + $0x48] ss:$16 sps:$4 sm:$0xff]  }
  0x27   :  { %v1122_v44 = vld [vmem:[%s1570_s0 + $0x64] ss:$16 sps:$4 sm:$0xff]   ;;  %v1124_v45 = vld [vmem:[%s1570_s0 + $0x6c] ss:$16 sps:$4 sm:$0xff]   ;;  %v1126_v46 = vld [vmem:[%s1570_s0 + $0x60] ss:$16 sps:$4 sm:$0xff]  }
  0x28   :  { %v1127_v47 = vld [vmem:[%s1570_s0 + $0x68] ss:$16 sps:$4 sm:$0xff]   ;;  %vm504_vm0 = vcmask 261120   ;;  %s1177_s10 = smov 16   ;;  %vm761_vm9 = vcmask 130048   ;;  %s1179_s6 = smov [#allocation2]  }
  0x29   :  { %s930_s7 = sshll.u32 %s1179_s6, 4  ;;  %vm920_vm10 = vcmask 7168   ;;  %vm922_vm11 = vcmask 8192   ;;  %s931_s7 = int_to_ptr.vmem [resolvable:$true] %s930_s7 }
  0x2a   :  { %s1152_s8 = scalar_lea.vmem %s931_s7, 16  ;;  %s1156_s9 = scalar_lea.vmem %s931_s7, 32 }
  0x2b   :  { %415 = vmatmul.mubr.bf16.gmra.mrb[4].mxu0 %v1114_v38  ;;  %p1153_p0 = scmp.ne.s32.totalorder %s931_s7, %s1152_s8  ;;  %p1157_p1 = scmp.lt.s32.totalorder %s931_s7, %s931_s7 }
  0x2c   :  { %480 = vmatmul.mubr.bf16.gmra.mrb[4].mxu1 %v1115_v39  ;;  %422 = vmatprep.mubr.bf16.mxu0 %v1116_v40  ;;  %p1158_p2 = scmp.lt.s32.totalorder %s1156_s9, %s1152_s8 }
  0x2d   :  { %487 = vmatprep.mubr.bf16.mxu1 %v1118_v41 }
  0x2e   :  { %p1159_p3 = por %p1158_p2, %p1157_p1 }
  0x30   :  { %p1160_p4 = pnand %p1159_p3, %p1153_p0 }
  0x33   :  { %423 = vmatmul.mubr.bf16.gmra.mrb[8].mxu0 %v1120_v42 }
  0x34   :  { %488 = vmatmul.mubr.bf16.gmra.mrb[8].mxu1 %v1121_v43  ;;  %430 = vmatprep.mubr.bf16.mxu0 %v1122_v44 }
  0x35   :  { %495 = vmatprep.mubr.bf16.mxu1 %v1124_v45 }
  0x3b   :  { %431 = vmatmul.mubr.bf16.gmra.mrb[12].mxu0 %v1126_v46 }
  0x3c   :  { %496 = vmatmul.mubr.bf16.gmra.mrb[12].mxu1 %v1127_v47 }
  0xf6   :  { %v1002_v48 = vpop.f32.mrb[0].mxu0 }
  0xf7   :  { %v1042_v49 = vpop.f32.mrb[0].mxu1  ;;  %v1003_v50 = vpop.f32.mrb[1].mxu0 }
  0xf8   :  { %v1004_v51 = vadd.f32 %v1003_v50, %v1002_v48  ;;  %v1043_v52 = vpop.f32.mrb[1].mxu1  ;;  %v1005_v53 = vpop.f32.mrb[2].mxu0  ;;  %v1176_v48 = vmov 0  }
  0xf9   :  { %v1044_v54 = vadd.f32 %v1043_v52, %v1042_v49  ;;  %v1045_v55 = vpop.f32.mrb[2].mxu1  ;;  %v1006_v56 = vpop.f32.mrb[3].mxu0  ;;  %1070 = vset.pattern.permute.xlu1 %v1176_v48  ;;  %1071 = vset.pattern.permute.xlu0 %v1176_v48  ;;  %v586_v48 = vld [vmem:[%s1572_s2 + $0x8] sm:$0xff] }
  0xfa   :  { %v1007_v57 = vadd.f32 %v1006_v56, %v1005_v53  ;;  %v1046_v58 = vpop.f32.mrb[3].mxu1 }
  0xfb   :  { %v1047_v59 = vadd.f32 %v1046_v58, %v1045_v55  ;;  %v1354_v60 = vadd.f32 %v1044_v54, %v1004_v51 }
  0xfd   :  { %v505_v61 = vsel %vm504_vm0, %v1354_v60, 0.0  ;;  %v1358_v62 = vadd.f32 %v1047_v59, %v1007_v57 }
  0xfe   :  { %506 = vadd.xlane.f32.xlu0 %v505_v61  ;;  %v1008_v63 = vpop.f32.mrb[4].mxu0 }
  0xff   :  { %v1048_v0 = vpop.f32.mrb[4].mxu1  ;;  %v1009_v1 = vpop.f32.mrb[5].mxu0  ;;  %v508_v8 = vsel %vm504_vm0, %v1358_v62, 0.0 }
 0x100   :  { %v1010_v2 = vadd.f32 %v1009_v1, %v1008_v63  ;;  %v1049_v3 = vpop.f32.mrb[5].mxu1  ;;  %v1011_v4 = vpop.f32.mrb[6].mxu0 }
 0x101   :  { %v1050_v5 = vadd.f32 %v1049_v3, %v1048_v0  ;;  %v1051_v6 = vpop.f32.mrb[6].mxu1  ;;  %v1012_v7 = vpop.f32.mrb[7].mxu0 }
 0x102   :  { %v1013_v9 = vadd.f32 %v1012_v7, %v1011_v4  ;;  %v1052_v10 = vpop.f32.mrb[7].mxu1  ;;  %509 = vadd.xlane.f32.xlu0 %v508_v8 }
 0x103   :  { %v1053_v11 = vadd.f32 %v1052_v10, %v1051_v6  ;;  %v482_v12 = vadd.f32 %v1050_v5, %v1010_v2 }
 0x105   :  { %v511_v13 = vsel %vm504_vm0, %v482_v12, 0.0  ;;  %v485_v14 = vadd.f32 %v1053_v11, %v1013_v9 }
 0x106   :  { %512 = vadd.xlane.f32.xlu1 %v511_v13  ;;  %v1014_v15 = vpop.f32.mrb[8].mxu0 }
 0x107   :  { %v1054_v16 = vpop.f32.mrb[8].mxu1  ;;  %v1015_v17 = vpop.f32.mrb[9].mxu0  ;;  %v514_v24 = vsel %vm504_vm0, %v485_v14, 0.0 }
 0x108   :  { %v1016_v18 = vadd.f32 %v1015_v17, %v1014_v15  ;;  %v1055_v19 = vpop.f32.mrb[9].mxu1  ;;  %v1017_v20 = vpop.f32.mrb[10].mxu0 }
 0x109   :  { %v1056_v21 = vadd.f32 %v1055_v19, %v1054_v16  ;;  %v1057_v22 = vpop.f32.mrb[10].mxu1  ;;  %v1018_v23 = vpop.f32.mrb[11].mxu0 }
 0x10a   :  { %v1019_v25 = vadd.f32 %v1018_v23, %v1017_v20  ;;  %v1058_v26 = vpop.f32.mrb[11].mxu1  ;;  %515 = vadd.xlane.f32.xlu1 %v514_v24 }
 0x10b   :  { %v1059_v27 = vadd.f32 %v1058_v26, %v1057_v22  ;;  %v490_v28 = vadd.f32 %v1056_v21, %v1016_v18  ;;  %v666_v26 = vld [vmem:[%s1573_s3 + $0x8] sm:$0xff] }
 0x10d   :  { %v517_v29 = vsel %vm504_vm0, %v490_v28, 0.0  ;;  %v493_v30 = vadd.f32 %v1059_v27, %v1019_v25  ;;  %v665_v25 = vld [vmem:[%s1573_s3] sm:$0xff]  ;;  %v667_v27 = vld [vmem:[%s1573_s3 + $0x10] sm:$0xff] }
 0x10e   :  { %518 = vadd.xlane.f32.xlu0 %v517_v29  ;;  %v1020_v31 = vpop.f32.mrb[12].mxu0  ;;  %v669_v29 = vld [vmem:[%s1573_s3 + $0x20] sm:$0xff] }
 0x10f   :  { %v1060_v32 = vpop.f32.mrb[12].mxu1  ;;  %v1021_v33 = vpop.f32.mrb[13].mxu0  ;;  %v520_v34 = vsel %vm504_vm0, %v493_v30, 0.0 }
 0x110   :  { %v1022_v35 = vadd.f32 %v1021_v33, %v1020_v31  ;;  %v1061_v36 = vpop.f32.mrb[13].mxu1  ;;  %521 = vadd.xlane.f32.xlu1 %v520_v34  ;;  %v1023_v37 = vpop.f32.mrb[14].mxu0 }
 0x111   :  { %v1062_v38 = vadd.f32 %v1061_v36, %v1060_v32  ;;  %v1063_v39 = vpop.f32.mrb[14].mxu1  ;;  %v1024_v40 = vpop.f32.mrb[15].mxu0 }
 0x112   :  { %v1025_v41 = vadd.f32 %v1024_v40, %v1023_v37  ;;  %v1064_v42 = vpop.f32.mrb[15].mxu1 }
 0x113   :  { %v1065_v43 = vadd.f32 %v1064_v42, %v1063_v39  ;;  %v498_v44 = vadd.f32 %v1062_v38, %v1022_v35  ;;  %v585_v42 = vld [vmem:[%s1572_s2] sm:$0xff] }
 0x115   :  { %v523_v45 = vsel %vm504_vm0, %v498_v44, 0.0  ;;  %v501_v46 = vadd.f32 %v1065_v43, %v1025_v41 }
 0x116   :  { %524 = vadd.xlane.f32.xlu0 %v523_v45 }
 0x117   :  { %v526_v47 = vsel %vm504_vm0, %v501_v46, 0.0 }
 0x118   :  { %527 = vadd.xlane.f32.xlu1 %v526_v47 }
 0x18b   :  { %v507_v49 = vpop.xlane.xlu0 %506 }
 0x18c   :  { %v529_v50 = vmul.f32 0.03125, %v507_v49 }
 0x18e   :  { %v1369_v51 = vsub.f32 %v1354_v60, %v529_v50 }
 0x18f   :  { %v510_v52 = vpop.xlane.xlu0 %509 }
 0x190   :  { %v530_v53 = vmul.f32 0.03125, %v510_v52  ;;  %v545_v54 = vmul.f32 %v1369_v51, %v1369_v51 }
 0x192   :  { %v1374_v55 = vsub.f32 %v1358_v62, %v530_v53  ;;  %v553_v56 = vsel %vm504_vm0, %v545_v54, 0.0  ;;  %v672_v54 = vld [vmem:[%s1573_s3 + $0x38] sm:$0xff] }
 0x193   :  { %v513_v57 = vpop.xlane.xlu1 %512  ;;  %554 = vadd.xlane.f32.xlu0 %v553_v56 }
 0x194   :  { %v531_v58 = vmul.f32 0.03125, %v513_v57  ;;  %v546_v59 = vmul.f32 %v1374_v55, %v1374_v55 }
 0x196   :  { %v1379_v61 = vsub.f32 %v482_v12, %v531_v58  ;;  %v556_v60 = vsel %vm504_vm0, %v546_v59, 0.0  ;;  %v587_v58 = vld [vmem:[%s1572_s2 + $0x10] sm:$0xff] }
 0x197   :  { %v516_v63 = vpop.xlane.xlu1 %515  ;;  %557 = vadd.xlane.f32.xlu1 %v556_v60  ;;  %v1443_v60 = vld [vmem:[%s1574_s4 + $0x8] sm:$0xff] }
 0x198   :  { %v532_v0 = vmul.f32 0.03125, %v516_v63  ;;  %v547_v1 = vmul.f32 %v1379_v61, %v1379_v61 }
 0x19a   :  { %v1384_v62 = vsub.f32 %v485_v14, %v532_v0  ;;  %v559_v2 = vsel %vm504_vm0, %v547_v1, 0.0 }
 0x19b   :  { %560 = vadd.xlane.f32.xlu0 %v559_v2  ;;  %v519_v3 = vpop.xlane.xlu0 %518  ;;  %v588_v2 = vld [vmem:[%s1572_s2 + $0x18] sm:$0xff] }
 0x19c   :  { %v533_v4 = vmul.f32 0.03125, %v519_v3  ;;  %v548_v5 = vmul.f32 %v1384_v62, %v1384_v62 }
 0x19d   :  { %v522_v6 = vpop.xlane.xlu1 %521 }
 0x19e   :  { %v1389_v7 = vsub.f32 %v490_v28, %v533_v4  ;;  %v534_v8 = vmul.f32 0.03125, %v522_v6  ;;  %v562_v9 = vsel %vm504_vm0, %v548_v5, 0.0  ;;  %v668_v28 = vld [vmem:[%s1573_s3 + $0x18] sm:$0xff] }
 0x19f   :  { %563 = vadd.xlane.f32.xlu1 %v562_v9 }
 0x1a0   :  { %v1392_v10 = vsub.f32 %v493_v30, %v534_v8  ;;  %v549_v11 = vmul.f32 %v1389_v7, %v1389_v7  ;;  %v670_v30 = vld [vmem:[%s1573_s3 + $0x28] sm:$0xff] }
 0x1a2   :  { %v565_v12 = vsel %vm504_vm0, %v549_v11, 0.0  ;;  %v550_v13 = vmul.f32 %v1392_v10, %v1392_v10  ;;  %v589_v11 = vld [vmem:[%s1572_s2 + $0x20] sm:$0xff] }
 0x1a3   :  { %566 = vadd.xlane.f32.xlu0 %v565_v12  ;;  %v525_v14 = vpop.xlane.xlu0 %524 }
 0x1a4   :  { %v535_v15 = vmul.f32 0.03125, %v525_v14  ;;  %v568_v16 = vsel %vm504_vm0, %v550_v13, 0.0  ;;  %v590_v13 = vld [vmem:[%s1572_s2 + $0x28] sm:$0xff] }
 0x1a5   :  { %v528_v17 = vpop.xlane.xlu1 %527  ;;  %569 = vadd.xlane.f32.xlu1 %v568_v16 }
 0x1a6   :  { %v1400_v18 = vsub.f32 %v498_v44, %v535_v15  ;;  %v536_v19 = vmul.f32 0.03125, %v528_v17  ;;  %v671_v17 = vld [vmem:[%s1573_s3 + $0x30] sm:$0xff] }
 0x1a8   :  { %v1402_v20 = vsub.f32 %v501_v46, %v536_v19  ;;  %v551_v21 = vmul.f32 %v1400_v18, %v1400_v18  ;;  %v591_v19 = vld [vmem:[%s1572_s2 + $0x30] sm:$0xff] }
 0x1aa   :  { %v571_v22 = vsel %vm504_vm0, %v551_v21, 0.0  ;;  %v552_v23 = vmul.f32 %v1402_v20, %v1402_v20 }
 0x1ab   :  { %572 = vadd.xlane.f32.xlu0 %v571_v22  ;;  %v1465_v22 = vld [vmem:[%s1574_s4] sm:$0xff] }
 0x1ac   :  { %v574_v24 = vsel %vm504_vm0, %v552_v23, 0.0 }
 0x1ad   :  { %575 = vadd.xlane.f32.xlu1 %v574_v24 }
 0x1be   :  { %675 = vperm.xlu1 %1070, %v665_v25   ;;  %v592_v25 = vld [vmem:[%s1572_s2 + $0x38] sm:$0xff] }
 0x1c2   :  { %680 = vperm.xlu1 %1070, %v666_v26   ;;  %v1475_v26 = vld [vmem:[%s1574_s4 + $0x10] sm:$0xff] }
 0x1c6   :  { %685 = vperm.xlu1 %1070, %v667_v27  }
 0x1ca   :  { %690 = vperm.xlu1 %1070, %v668_v28   ;;  %v1482_v28 = vld [vmem:[%s1574_s4 + $0x20] sm:$0xff] }
 0x1ce   :  { %695 = vperm.xlu1 %1070, %v669_v29   ;;  %v1487_v29 = vld [vmem:[%s1574_s4 + $0x18] sm:$0xff] }
 0x1d2   :  { %700 = vperm.xlu1 %1070, %v670_v30   ;;  %v1496_v30 = vld [vmem:[%s1574_s4 + $0x30] sm:$0xff] }
 0x220   :  { %v555_v31 = vpop.xlane.xlu0 %554 }
 0x221   :  { %v577_v32 = vmul.f32 0.03125, %v555_v31  ;;  %v1501_v31 = vld [vmem:[%s1574_s4 + $0x28] sm:$0xff] }
 0x223   :  { %v593_v33 = vadd.f32 1e-05, %v577_v32  ;;  %v1510_v32 = vld [vmem:[%s1574_s4 + $0x38] sm:$0xff]  ;;  %s1178_s4 = smov 112  }
 0x224   :  { %v558_v34 = vpop.xlane.xlu1 %557 }
 0x225   :  { %1128 = vrsqrt.f32 %v593_v33  ;;  %v578_v35 = vmul.f32 0.03125, %v558_v34 }
 0x227   :  { %v594_v36 = vadd.f32 1e-05, %v578_v35 }
 0x228   :  { %v561_v37 = vpop.xlane.xlu0 %560 }
 0x229   :  { %1130 = vrsqrt.f32 %v594_v36  ;;  %v579_v38 = vmul.f32 0.03125, %v561_v37 }
 0x22b   :  { %v595_v39 = vadd.f32 1e-05, %v579_v38 }
 0x22c   :  { %v564_v40 = vpop.xlane.xlu1 %563 }
 0x22d   :  { %1132 = vrsqrt.f32 %v595_v39  ;;  %v580_v41 = vmul.f32 0.03125, %v564_v40 }
 0x22f   :  { %v1129_v43 = vpop.eup %1128  ;;  %v596_v44 = vadd.f32 1e-05, %v580_v41 }
 0x230   :  { %v567_v45 = vpop.xlane.xlu0 %566  ;;  %v609_v46 = vmul.f32 %v1129_v43, %v585_v42 }
 0x231   :  { %1134 = vrsqrt.f32 %v596_v44  ;;  %v581_v47 = vmul.f32 0.03125, %v567_v45 }
 0x232   :  { %v570_v49 = vpop.xlane.xlu1 %569  ;;  %619 = vperm.xlu0 %1071, %v609_v46  }
 0x233   :  { %v1131_v50 = vpop.eup %1130  ;;  %v597_v52 = vadd.f32 1e-05, %v581_v47  ;;  %v582_v53 = vmul.f32 0.03125, %v570_v49 }
 0x234   :  { %v610_v56 = vmul.f32 %v1131_v50, %v586_v48 }
 0x235   :  { %1136 = vrsqrt.f32 %v597_v52  ;;  %v598_v57 = vadd.f32 1e-05, %v582_v53 }
 0x236   :  { %624 = vperm.xlu1 %1070, %v610_v56   ;;  %710 = vperm.xlu0 %1071, %v672_v54  }
 0x237   :  { %v1133_v59 = vpop.eup %1132  ;;  %1138 = vrsqrt.f32 %v598_v57 }
 0x238   :  { %v573_v63 = vpop.xlane.xlu0 %572  ;;  %v611_v0 = vmul.f32 %v1133_v59, %v587_v58 }
 0x239   :  { %v583_v1 = vmul.f32 0.03125, %v573_v63 }
 0x23a   :  { %v576_v3 = vpop.xlane.xlu1 %575  ;;  %629 = vperm.xlu1 %1070, %v611_v0   ;;  %815 = vrot.lane.b32.xlu0 %v1443_v60, %s1177_s10 }
 0x23b   :  { %v1135_v4 = vpop.eup %1134  ;;  %v599_v5 = vadd.f32 1e-05, %v583_v1  ;;  %v584_v6 = vmul.f32 0.03125, %v576_v3 }
 0x23c   :  { %v612_v8 = vmul.f32 %v1135_v4, %v588_v2 }
 0x23d   :  { %1140 = vrsqrt.f32 %v599_v5  ;;  %v600_v9 = vadd.f32 1e-05, %v584_v6 }
 0x23e   :  { %634 = vperm.xlu1 %1070, %v612_v8   ;;  %v676_v33 = vpop.permute.xlu1 %675 }
 0x23f   :  { %v1137_v12 = vpop.eup %1136  ;;  %1142 = vrsqrt.f32 %v600_v9 }
 0x240   :  { %v613_v14 = vmul.f32 %v1137_v12, %v589_v11 }
 0x241   :  { %v1139_v15 = vpop.eup %1138 }
 0x242   :  { %639 = vperm.xlu1 %1070, %v613_v14   ;;  %v614_v16 = vmul.f32 %v1139_v15, %v590_v13  ;;  %v681_v34 = vpop.permute.xlu1 %680 }
 0x244   :  { %644 = vperm.xlu0 %1071, %v614_v16  }
 0x246   :  { %705 = vperm.xlu1 %1070, %v671_v17   ;;  %v686_v35 = vpop.permute.xlu1 %685 }
 0x247   :  { %v1141_v21 = vpop.eup %1140 }
 0x248   :  { %v615_v23 = vmul.f32 %v1141_v21, %v591_v19 }
 0x249   :  { %v1143_v24 = vpop.eup %1142 }
 0x24a   :  { %649 = vperm.xlu0 %1071, %v615_v23   ;;  %813 = vrot.lane.b32.xlu1 %v1465_v22, %s1177_s10  ;;  %v616_v27 = vmul.f32 %v1143_v24, %v592_v25  ;;  %v691_v36 = vpop.permute.xlu1 %690 }
 0x24e   :  { %654 = vperm.xlu0 %1071, %v616_v27   ;;  %817 = vrot.lane.b32.xlu1 %v1475_v26, %s1177_s10  ;;  %v696_v37 = vpop.permute.xlu1 %695 }
 0x252   :  { %821 = vrot.lane.b32.xlu1 %v1482_v28, %s1177_s10  ;;  %819 = vrot.lane.b32.xlu0 %v1487_v29, %s1177_s10  ;;  %v701_v38 = vpop.permute.xlu1 %700 }
 0x256   :  { %825 = vrot.lane.b32.xlu1 %v1496_v30, %s1177_s10  ;;  %823 = vrot.lane.b32.xlu0 %v1501_v31, %s1177_s10 }
 0x25a   :  { %827 = vrot.lane.b32.xlu0 %v1510_v32, %s1177_s10 }
 0x2b1   :  { %v620_v39 = vpop.permute.xlu0 %619 }
 0x2b2   :  { %v657_v48 = vmul.f32 %v620_v39, %v1369_v51 }
 0x2b4   :  { %v713_v53 = vadd.f32 %v676_v33, %v657_v48 }
 0x2b5   :  { %v625_v40 = vpop.permute.xlu1 %624  ;;  %v711_v42 = vpop.permute.xlu0 %710 }
 0x2b6   :  { %v658_v41 = vmul.f32 %v625_v40, %v1374_v55  ;;  %v729_v63 = vmul.f32 0.2, %v713_v53  ;;  %vm721_vm2 = vcmp.gt.f32.partialorder %v713_v53, 0.0 }
 0x2b8   :  { %v714_v43 = vadd.f32 %v681_v34, %v658_v41  ;;  %v737_v4 = vsel %vm721_vm2, %v713_v53, %v729_v63 }
 0x2b9   :  { %v630_v44 = vpop.permute.xlu1 %629  ;;  %v816_v47 = vpop.permute.xlu0 %815 }
 0x2ba   :  { %vm722_vm1 = vcmp.gt.f32.partialorder %v714_v43, 0.0  ;;  %v730_v45 = vmul.f32 0.2, %v714_v43  ;;  %v659_v52 = vmul.f32 %v630_v44, %v1379_v61 }
 0x2bc   :  { %v1515_v46 = vsel %vm722_vm1, %v714_v43, %v730_v45  ;;  %v715_v54 = vadd.f32 %v686_v35, %v659_v52 }
 0x2bd   :  { %v838_v49 = vmul.f32 %v816_v47, %v1515_v46  ;;  %v635_v50 = vpop.permute.xlu1 %634  ;;  %v754_v41 = vmul.f32 %v1443_v60, %v1515_v46 }
 0x2be   :  { %v660_v56 = vmul.f32 %v635_v50, %v1384_v62  ;;  %v731_v0 = vmul.f32 0.2, %v715_v54  ;;  %vm723_vm3 = vcmp.gt.f32.partialorder %v715_v54, 0.0 }
 0x2bf   :  { %855 = vrot.lane.b32.xlu0 %v838_v49, %s1178_s4  ;;  %v765_v43 = vsel %vm761_vm9, %v754_v41, 0.0 }
 0x2c0   :  { %v716_v51 = vadd.f32 %v691_v36, %v660_v56  ;;  %v739_v62 = vsel %vm723_vm3, %v715_v54, %v731_v0 }
 0x2c1   :  { %v640_v55 = vpop.permute.xlu1 %639  ;;  %v755_v44 = vmul.f32 %v1475_v26, %v739_v62 }
 0x2c2   :  { %v661_v57 = vmul.f32 %v640_v55, %v1389_v7  ;;  %v732_v7 = vmul.f32 0.2, %v716_v51  ;;  %vm724_vm4 = vcmp.gt.f32.partialorder %v716_v51, 0.0 }
 0x2c3   :  { %v645_v58 = vpop.permute.xlu0 %644  ;;  %v768_v47 = vsel %vm761_vm9, %v755_v44, 0.0 }
 0x2c4   :  { %v717_v1 = vadd.f32 %v696_v37, %v661_v57  ;;  %v662_v2 = vmul.f32 %v645_v58, %v1392_v10  ;;  %v740_v15 = vsel %vm724_vm4, %v716_v51, %v732_v7 }
 0x2c5   :  { %v706_v59 = vpop.permute.xlu1 %705  ;;  %v756_v48 = vmul.f32 %v1487_v29, %v740_v15 }
 0x2c6   :  { %v718_v8 = vadd.f32 %v701_v38, %v662_v2  ;;  %v733_v13 = vmul.f32 0.2, %v717_v1  ;;  %vm725_vm5 = vcmp.gt.f32.partialorder %v717_v1, 0.0 }
 0x2c7   :  { %v771_v49 = vsel %vm761_vm9, %v756_v48, 0.0 }
 0x2c8   :  { %v741_v17 = vsel %vm725_vm5, %v717_v1, %v733_v13  ;;  %v734_v23 = vmul.f32 0.2, %v718_v8  ;;  %vm726_vm7 = vcmp.gt.f32.partialorder %v718_v8, 0.0 }
 0x2c9   :  { %v814_v3 = vpop.permute.xlu1 %813  ;;  %v650_v5 = vpop.permute.xlu0 %649  ;;  %v757_v60 = vmul.f32 %v1482_v28, %v741_v17 }
 0x2ca   :  { %v837_v61 = vmul.f32 %v814_v3, %v737_v4  ;;  %v663_v6 = vmul.f32 %v650_v5, %v1400_v18  ;;  %v742_v33 = vsel %vm726_vm7, %v718_v8, %v734_v23 }
 0x2cb   :  { %v758_v53 = vmul.f32 %v1501_v31, %v742_v33 }
 0x2cc   :  { %853 = vrot.lane.b32.xlu1 %v837_v61, %s1178_s4  ;;  %v719_v9 = vadd.f32 %v706_v59, %v663_v6 }
 0x2cd   :  { %v818_v11 = vpop.permute.xlu1 %817  ;;  %v655_v12 = vpop.permute.xlu0 %654  ;;  %v777_v55 = vsel %vm761_vm9, %v758_v53, 0.0 }
 0x2ce   :  { %v839_v14 = vmul.f32 %v818_v11, %v739_v62  ;;  %v664_v10 = vmul.f32 %v655_v12, %v1402_v20  ;;  %v735_v21 = vmul.f32 0.2, %v719_v9  ;;  %vm727_vm6 = vcmp.gt.f32.partialorder %v719_v9, 0.0 }
 0x2d0   :  { %857 = vrot.lane.b32.xlu1 %v839_v14, %s1178_s4  ;;  %v720_v16 = vadd.f32 %v711_v42, %v664_v10  ;;  %v743_v20 = vsel %vm727_vm6, %v719_v9, %v735_v21  ;;  %v753_v42 = vmul.f32 %v1465_v22, %v737_v4  ;;  %v774_v22 = vsel %vm761_vm9, %v757_v60, 0.0 }
 0x2d1   :  { %v822_v18 = vpop.permute.xlu1 %821  ;;  %v820_v19 = vpop.permute.xlu0 %819  ;;  %v759_v28 = vmul.f32 %v1496_v30, %v743_v20 }
 0x2d2   :  { %v841_v24 = vmul.f32 %v822_v18, %v741_v17  ;;  %v840_v25 = vmul.f32 %v820_v19, %v740_v15  ;;  %v736_v35 = vmul.f32 0.2, %v720_v16  ;;  %vm728_vm8 = vcmp.gt.f32.partialorder %v720_v16, 0.0 }
 0x2d3   :  { %v762_v45 = vsel %vm761_vm9, %v753_v42, 0.0  ;;  %v780_v57 = vsel %vm761_vm9, %v759_v28, 0.0 }
 0x2d4   :  { %861 = vrot.lane.b32.xlu1 %v841_v24, %s1178_s4  ;;  %859 = vrot.lane.b32.xlu0 %v840_v25, %s1178_s4  ;;  %v744_v38 = vsel %vm728_vm8, %v720_v16, %v736_v35 }
 0x2d5   :  { %v826_v27 = vpop.permute.xlu1 %825  ;;  %v824_v34 = vpop.permute.xlu0 %823  ;;  %v760_v59 = vmul.f32 %v1510_v32, %v744_v38 }
 0x2d6   :  { %v843_v36 = vmul.f32 %v826_v27, %v743_v20  ;;  %v842_v37 = vmul.f32 %v824_v34, %v742_v33 }
 0x2d7   :  { %v783_v31 = vsel %vm761_vm9, %v760_v59, 0.0 }
 0x2d8   :  { %865 = vrot.lane.b32.xlu1 %v843_v36, %s1178_s4  ;;  %863 = vrot.lane.b32.xlu0 %v842_v37, %s1178_s4 }
 0x2d9   :  { %v828_v39 = vpop.permute.xlu0 %827 }
 0x2da   :  { %v844_v40 = vmul.f32 %v828_v39, %v744_v38 }
 0x2dc   :  { %867 = vrot.lane.b32.xlu0 %v844_v40, %s1178_s4 }
 0x2fb   :  { %766 = vadd.xlane.f32.xlu0 %v765_v43 }
 0x2fc   :  { %763 = vadd.xlane.f32.xlu1 %v762_v45 }
 0x2ff   :  { %769 = vadd.xlane.f32.xlu0 %v768_v47 }
 0x303   :  { %772 = vadd.xlane.f32.xlu0 %v771_v49 }
 0x307   :  { %775 = vadd.xlane.f32.xlu0 %v774_v22 }
 0x331   :  { %v856_v46 = vpop.permute.xlu0 %855 }
 0x332   :  { %v880_v26 = vsel %vm761_vm9, %v856_v46, 0.0 }
 0x333   :  { %881 = vadd.xlane.f32.xlu1 %v880_v26 }
 0x33e   :  { %v854_v50 = vpop.permute.xlu1 %853 }
 0x33f   :  { %v877_v52 = vsel %vm761_vm9, %v854_v50, 0.0 }
 0x340   :  { %878 = vadd.xlane.f32.xlu0 %v877_v52 }
 0x342   :  { %v858_v29 = vpop.permute.xlu1 %857 }
 0x343   :  { %v883_v54 = vsel %vm761_vm9, %v858_v29, 0.0 }
 0x344   :  { %778 = vadd.xlane.f32.xlu0 %v777_v55  ;;  %884 = vadd.xlane.f32.xlu1 %v883_v54 }
 0x346   :  { %v860_v56 = vpop.permute.xlu0 %859  ;;  %v862_v63 = vpop.permute.xlu1 %861 }
 0x347   :  { %v886_v58 = vsel %vm761_vm9, %v860_v56, 0.0  ;;  %v889_v51 = vsel %vm761_vm9, %v862_v63, 0.0 }
 0x348   :  { %781 = vadd.xlane.f32.xlu0 %v780_v57  ;;  %887 = vadd.xlane.f32.xlu1 %v886_v58 }
 0x34a   :  { %v864_v0 = vpop.permute.xlu0 %863  ;;  %v866_v1 = vpop.permute.xlu1 %865 }
 0x34b   :  { %v892_v30 = vsel %vm761_vm9, %v864_v0, 0.0  ;;  %v895_v2 = vsel %vm761_vm9, %v866_v1, 0.0 }
 0x34c   :  { %784 = vadd.xlane.f32.xlu0 %v783_v31  ;;  %890 = vadd.xlane.f32.xlu1 %v889_v51 }
 0x34e   :  { %v868_v3 = vpop.permute.xlu0 %867 }
 0x34f   :  { %v898_v32 = vsel %vm761_vm9, %v868_v3, 0.0 }
 0x350   :  { %893 = vadd.xlane.f32.xlu1 %v892_v30 }
 0x354   :  { %896 = vadd.xlane.f32.xlu1 %v895_v2 }
 0x358   :  { %899 = vadd.xlane.f32.xlu1 %v898_v32 }
 0x388   :  { %v767_v4 = vpop.xlane.xlu0 %766 }
 0x389   :  { %v764_v6 = vpop.xlane.xlu1 %763 }
 0x38a   :  { %v786_v7 = vadd.f32 %v767_v4, %v764_v6 }
 0x38c   :  { %v770_v5 = vpop.xlane.xlu0 %769 }
 0x38d   :  { %v787_v11 = vadd.f32 %v786_v7, %v770_v5 }
 0x390   :  { %v773_v61 = vpop.xlane.xlu0 %772 }
 0x391   :  { %v788_v14 = vadd.f32 %v787_v11, %v773_v61 }
 0x394   :  { %v776_v62 = vpop.xlane.xlu0 %775 }
 0x395   :  { %v789_v10 = vadd.f32 %v788_v14, %v776_v62 }
 0x3c0   :  { %v882_v8 = vpop.xlane.xlu1 %881 }
 0x3cd   :  { %v879_v9 = vpop.xlane.xlu0 %878 }
 0x3ce   :  { %v901_v23 = vadd.f32 %v882_v8, %v879_v9 }
 0x3d1   :  { %v885_v12 = vpop.xlane.xlu1 %884  ;;  %v779_v13 = vpop.xlane.xlu0 %778 }
 0x3d2   :  { %v790_v17 = vadd.f32 %v789_v10, %v779_v13  ;;  %v902_v25 = vadd.f32 %v901_v23, %v885_v12 }
 0x3d5   :  { %v888_v15 = vpop.xlane.xlu1 %887  ;;  %v782_v16 = vpop.xlane.xlu0 %781 }
 0x3d6   :  { %v791_v18 = vadd.f32 %v790_v17, %v782_v16  ;;  %v903_v33 = vadd.f32 %v902_v25, %v888_v15 }
 0x3d9   :  { %v891_v19 = vpop.xlane.xlu1 %890  ;;  %v785_v21 = vpop.xlane.xlu0 %784 }
 0x3da   :  { %v792_v24 = vadd.f32 %v791_v18, %v785_v21  ;;  %v904_v35 = vadd.f32 %v903_v33, %v891_v19 }
 0x3dc   :  { %v793_v27 = vrot.slane %v792_v24, 4 }
 0x3dd   :  { %v894_v20 = vpop.xlane.xlu1 %893 }
 0x3de   :  { %v794_v34 = vadd.f32 %v793_v27, %v792_v24  ;;  %v905_v39 = vadd.f32 %v904_v35, %v894_v20 }
 0x3e0   :  { %v795_v36 = vrot.slane %v794_v34, 2 }
 0x3e1   :  { %v897_v37 = vpop.xlane.xlu1 %896 }
 0x3e2   :  { %v796_v38 = vadd.f32 %v795_v36, %v794_v34  ;;  %v906_v41 = vadd.f32 %v905_v39, %v897_v37 }
 0x3e4   :  { %v797_v40 = vrot.slane %v796_v38, 1 }
 0x3e5   :  { %v900_v42 = vpop.xlane.xlu1 %899 }
 0x3e6   :  { %v907_v43 = vadd.f32 %v906_v41, %v900_v42  ;;  %v798_v44 = vadd.f32 %v797_v40, %v796_v38 }
 0x3e8   :  { %v908_v45 = vrot.slane %v907_v43, 4  ;;  %v799_v48 = vsub.f32 0.0, %v798_v44 }
 0x3ea   :  { %v909_v47 = vadd.f32 %v908_v45, %v907_v43  ;;  %v800_v22 = vmul.f32 1.442695, %v799_v48 }
 0x3ec   :  { %v910_v49 = vrot.slane %v909_v47, 2  ;;  %1144 = vpow2.f32 %v800_v22 }
 0x3ee   :  { %v911_v60 = vadd.f32 %v910_v49, %v909_v47 }
 0x3f0   :  { %v912_v46 = vrot.slane %v911_v60, 1 }
 0x3f2   :  { %v913_v26 = vadd.f32 %v912_v46, %v911_v60 }
 0x3f4   :  { %v914_v50 = vsub.f32 0.0, %v913_v26 }
 0x3f6   :  { %v915_v52 = vmul.f32 1.442695, %v914_v50  ;;  %v1145_v53 = vpop.eup %1144 }
 0x3f7   :  { %v802_v29 = vadd.f32 1.0, %v1145_v53 }
 0x3f8   :  { %1146 = vpow2.f32 %v915_v52 }
 0x3f9   :  { %1148 = vrcp.f32 %v802_v29 }
 0x402   :  { %v1147_v55 = vpop.eup %1146 }
 0x403   :  { %v917_v54 = vadd.f32 1.0, %v1147_v55  ;;  %v1149_v28 = vpop.eup %1148 }
 0x405   :  { %1150 = vrcp.f32 %v917_v54 }
 0x40f   :  { %v1151_v56 = vpop.eup %1150 }
 0x410   :  { %v921_v57 = vsel %vm920_vm10, %v1149_v28, %v1151_v56 }
 0x411   :  { %923 = vst.msk [vmem:[#allocation2] sm:$0x1] %vm922_vm11, %v921_v57 }
 0x412   :  { %1163 = shalt.err (!%p1160_p4)
}
 0x413   :  { %s1164_s12 = scalar_lea.hbm %s1575_s5, 16 }
 0x414   :  { %p1165_p5 = scmp.ne.s32.totalorder %s1575_s5, %s1164_s12  ;;  %p1168_p6 = scmp.lt.u32.totalorder %s1164_s12, %s1575_s5 }
 0x416   :  { %p1170_p7 = pnand %p1168_p6, %p1165_p5 }
 0x418   :  { %1173 = shalt.err (!%p1170_p7)
}
 0x419   :  { %933 = dma.vmem_to_hbm [thread:$0]  %s931_s7, 16, %s1575_s5, [#allocation3]  }
 0x41a   :  { %1174 = dma.done.wait [#allocation3], 16  }
 0x41b   :  { %1175 = vsyncadd [#allocation3], 4294967280 }
 0x41c   :  { %937 = vsyncpa [#allocation3], 1 }

</bundles_post_ra>
